<compile_context>
chip_gen: v5e
topology: v5e:2x2
jax: 0.10.0
libtpu: 0.0.40
codegen_flags: <defaults>
</compile_context>

<pallas_src>
import functools
import math

import jax
import jax.numpy as jnp
from jax.experimental import pallas as pl
from jax.experimental.pallas import tpu as pltpu

SCALE = math.sqrt(0.5)  # torch.sqrt(FloatTensor([0.5]))
LANE = 128
MXU_DTYPE = jnp.bfloat16


# ------------------------------ small helpers ------------------------------ #
def _round_up(n, m):
    return ((n + m - 1) // m) * m


def _pad_to(x, axis, target):
    pad = target - x.shape[axis]
    if pad == 0:
        return x
    widths = [(0, 0)] * x.ndim
    widths[axis] = (0, pad)
    return jnp.pad(x, widths)


def _largest_divisor_le(n, limit):
    for d in range(min(n, limit), 0, -1):
        if n % d == 0:
            return d
    return 1


def _pick_tile(n, limit, mult):
    """Largest divisor of n that is <= limit and a multiple of `mult`
    (returns n itself when n <= limit)."""
    if n <= limit:
        return n
    best = mult
    d = mult
    while d <= limit:
        if n % d == 0:
            best = d
        d += mult
    return best


def _vmem_limit_bytes(*terms):
    total = int(sum(terms))
    # 2x headroom for compiler temporaries/spills, floor at 32 MiB, capped below
    # physical VMEM.  (v7x only has 64 MiB per TensorCore -- see streaming TODO.)
    return int(min(96 << 20, max(32 << 20, 2 * total + (8 << 20))))


# ----------------------- fused decoder-layers kernel ----------------------- #
def _decoder_layers_kernel(
        emb_ref, ek_ref, ev_ref,
        w_e2h_ref, b_e2h_ref,
        wa_ref, ba_ref, wb_ref, bb_ref,
        whe_ref, bhe_ref, weh_ref, beh_ref,
        w_h2e_ref, b_h2e_ref,
        o_ref,
        xp_ref,
        *, n_layers, kernel_size, pad_rows, s_valid, pad_value):
    NB, Tp, Ep = emb_ref.shape
    Sp = ek_ref.shape[1]
    Hp = w_e2h_ref.shape[1]
    K = kernel_size
    M = NB * Tp                                     # batch folded into matmul M

    emb3 = emb_ref[...]                             # (NB, Tp, Ep) bf16
    emb2 = emb3.reshape(M, Ep)
    ek = ek_ref[...]                                # (NB, Sp, Ep) bf16
    ev = ev_ref[...]                                # (NB, Sp, Ep) bf16

    def mm(a, w_ref, b_ref=None):
        out = jnp.dot(a.astype(MXU_DTYPE), w_ref[...],
                      preferred_element_type=jnp.float32)
        if b_ref is not None:
            out = out + b_ref[...]
        return out

    # ----- embtohid -----
    x = mm(emb2, w_e2h_ref, b_e2h_ref)              # (M, Hp) f32

    # causal left-pad rows (filled with trg_padding_idx, faithful to the torch
    # code) written ONCE into the bf16 VMEM scratch.
    xp_ref[:, 0:pad_rows, :] = jnp.full((NB, pad_rows, Hp), pad_value, MXU_DTYPE)

    # mask for zero-padded encoder-length lanes
    smask = jax.lax.broadcasted_iota(jnp.int32, (NB, Tp, Sp), 2) < s_valid

    base = pad_rows - (K - 1)
    # TODO(synk): for large n_layers switch to lax.fori_loop with dynamic
    # wa_ref[l]/wb_ref[l] indexing (bounds vreg live ranges), and on v7x stream
    # one layer's conv weights at a time via manual make_async_copy
    # double-buffering (pl.ANY inputs) instead of keeping all L layers resident.
    for l in range(n_layers):
        # ---- causal Conv1d as one im2col matmul per GLU half (bf16 operands) ----
        xp_ref[:, pad_rows:pad_rows + Tp, :] = (
            x.reshape(NB, Tp, Hp).astype(MXU_DTYPE))        # aligned sublane store
        xs = xp_ref[...]                                    # (NB, pad_rows+Tp, Hp) bf16
        im2col = jnp.concatenate(
            [xs[:, base + j:base + j + Tp, :] for j in range(K)], axis=2)
        im2col = im2col.reshape(M, K * Hp)                  # bf16, feeds MXU only
        acc_a = jnp.dot(im2col, wa_ref[l],
                        preferred_element_type=jnp.float32) + ba_ref[l]
        acc_b = jnp.dot(im2col, wb_ref[l],
                        preferred_element_type=jnp.float32) + bb_ref[l]
        conved = acc_a * jax.nn.sigmoid(acc_b)              # GLU, (M, Hp) f32

        # ---- attention ----
        conved_emb = mm(conved, whe_ref, bhe_ref)           # (M, Ep) f32
        combined = ((conved_emb + emb2) * SCALE).astype(MXU_DTYPE)
        combined = combined.reshape(NB, Tp, Ep)
        scores = jnp.einsum("bte,bse->bts", combined, ek,
                            preferred_element_type=jnp.float32)   # (NB, Tp, Sp)
        scores = jnp.where(smask, scores, -1e30)
        scores = scores - jnp.max(scores, axis=-1, keepdims=True)
        p = jnp.exp(scores)
        attn = p * pl.reciprocal(jnp.sum(p, axis=-1, keepdims=True), approx=True)
        ewa = jnp.einsum("bts,bse->bte", attn.astype(MXU_DTYPE), ev,
                         preferred_element_type=jnp.float32)      # (NB, Tp, Ep)
        ewa = mm(ewa.reshape(M, Ep), weh_ref, beh_ref)            # (M, Hp)

        conved = conved + ewa * SCALE
        x = (conved + x) * SCALE                                  # residual

    # ----- hidtoemb (fc_out is a separate vocab-tiled kernel) -----
    conved_e = mm(x, w_h2e_ref, b_h2e_ref)                        # (M, Ep) f32
    o_ref[...] = conved_e.reshape(NB, Tp, Ep).astype(o_ref.dtype)


# --------------------------- vocab-tiled fc_out ----------------------------- #
def _fc_out_kernel(x_ref, w_ref, b_ref, o_ref):
    o_ref[...] = (jnp.dot(x_ref[...], w_ref[...],
                          preferred_element_type=jnp.float32)
                  + b_ref[...]).astype(o_ref.dtype)


# --------------------- one-time weight preparation -------------------------- #
def prepare_decoder_params(params, kernel_size):
    """Pad / cast / GLU-split all weights once (hoisted out of the forward path)."""
    E = params["tok_emb"].shape[1]
    H = params["w_embtohid"].shape[1]
    O = params["w_fc_out"].shape[1]
    K = kernel_size
    L = len(params["conv_layers"])
    Ep, Hp, Op = _round_up(E, LANE), _round_up(H, LANE), _round_up(O, LANE)

    def padw(w, r, c):
        return _pad_to(_pad_to(w, 0, r), 1, c).astype(MXU_DTYPE)

    def padb(b, c):
        return _pad_to(b.reshape(1, -1), 1, c).astype(jnp.float32)

    wa_l, wb_l, ba_l, bb_l = [], [], [], []
    for layer in params["conv_layers"]:
        w = layer["w_conv"]                                        # (K, H, 2H)
        wa = jnp.pad(w[:, :, :H], ((0, 0), (0, Hp - H), (0, Hp - H)))
        wb = jnp.pad(w[:, :, H:], ((0, 0), (0, Hp - H), (0, Hp - H)))
        wa_l.append(wa.astype(MXU_DTYPE).reshape(K * Hp, Hp))
        wb_l.append(wb.astype(MXU_DTYPE).reshape(K * Hp, Hp))
        b = layer["b_conv"]
        ba_l.append(padb(b[:H], Hp))
        bb_l.append(padb(b[H:], Hp))

    prepared = dict(
        tok_emb=params["tok_emb"], pos_emb=params["pos_emb"],
        w_e2h=padw(params["w_embtohid"], Ep, Hp), b_e2h=padb(params["b_embtohid"], Hp),
        wa=jnp.stack(wa_l), ba=jnp.stack(ba_l),                    # (L, K*Hp, Hp) / (L,1,Hp)
        wb=jnp.stack(wb_l), bb=jnp.stack(bb_l),
        w_he=padw(params["w_attn_hidtoemb"], Hp, Ep), b_he=padb(params["b_attn_hidtoemb"], Ep),
        w_eh=padw(params["w_attn_embtohid"], Ep, Hp), b_eh=padb(params["b_attn_embtohid"], Hp),
        w_h2e=padw(params["w_hidtoemb"], Hp, Ep), b_h2e=padb(params["b_hidtoemb"], Ep),
        w_fc=padw(params["w_fc_out"], Ep, Op), b_fc=padb(params["b_fc_out"], Op),
    )
    meta = dict(E=E, H=H, O=O, Ep=Ep, Hp=Hp, Op=Op, K=K, L=L)
    return prepared, meta


# ------------------------------ full forward ------------------------------- #
def decoder_forward(prepared, meta, trg, encoder_conved, encoder_combined,
                    trg_padding_idx, logits_dtype=jnp.float32):
    B, T = trg.shape
    S = encoder_conved.shape[1]
    E, H, O = meta["E"], meta["H"], meta["O"]
    Ep, Hp, Op = meta["Ep"], meta["Hp"], meta["Op"]
    K, L = meta["K"], meta["L"]

    Tp = _round_up(T, 8)
    Sp = _round_up(S, LANE)
    PAD_ROWS = max(8, _round_up(K - 1, 8))

    # Fold a block of NB batch items into the matmul M dimension (target M>=256).
    NB = _largest_divisor_le(B, max(1, 256 // Tp))
    n_blk = B // NB
    # TODO(synk): on v7x with B==1 add a second parallel grid axis (e.g. a T
    # tile with a K-1 halo) so both TensorCores have work.

    # Embedding gathers are left to XLA (data-dependent gather).
    tok = jnp.take(prepared["tok_emb"], trg, axis=0)               # (B, T, E)
    pos = prepared["pos_emb"][:T][None, :, :]
    embedded = tok + pos                                           # dropout == id
    embedded_p = _pad_to(_pad_to(embedded, 2, Ep), 1, Tp).astype(MXU_DTYPE)

    ek = _pad_to(_pad_to(encoder_conved, 1, Sp), 2, Ep).astype(MXU_DTYPE)
    ev = _pad_to(_pad_to(encoder_combined, 1, Sp), 2, Ep).astype(MXU_DTYPE)

    bf, f4 = 2, 4
    vmem1 = _vmem_limit_bytes(
        (4 * Ep * Hp + 2 * L * K * Hp * Hp) * bf,           # resident weights (Buffered(1))
        (2 * Hp + 2 * Ep + 2 * L * Hp) * f4,                # biases
        2 * NB * (2 * Tp * Ep + 2 * Sp * Ep) * bf,          # double-buffered in/out blocks
        NB * (PAD_ROWS + Tp) * Hp * bf,                     # conv scratch
        NB * Tp * (Sp + K * Hp + 4 * Hp + 2 * Ep) * f4,     # live f32 activations
    )

    kernel = functools.partial(
        _decoder_layers_kernel,
        n_layers=L, kernel_size=K, pad_rows=PAD_ROWS,
        s_valid=S, pad_value=float(trg_padding_idx))

    def wspec(shape):
        # Weights/biases have constant block indices across the batch grid:
        # single-buffer them so VMEM holds one copy, not two.
        return pl.BlockSpec(shape, lambda b: (0,) * len(shape),
                            pipeline_mode=pl.Buffered(1))

    conved_e = pl.pallas_call(
        kernel,
        out_shape=jax.ShapeDtypeStruct((B, Tp, Ep), MXU_DTYPE),
        grid_spec=pltpu.PrefetchScalarGridSpec(
            num_scalar_prefetch=0,
            grid=(n_blk,),
            in_specs=[
                pl.BlockSpec((NB, Tp, Ep), lambda b: (b, 0, 0)),   # embedded
                pl.BlockSpec((NB, Sp, Ep), lambda b: (b, 0, 0)),   # encoder_conved
                pl.BlockSpec((NB, Sp, Ep), lambda b: (b, 0, 0)),   # encoder_combined
                wspec((Ep, Hp)), wspec((1, Hp)),                   # embtohid
                wspec((L, K * Hp, Hp)), wspec((L, 1, Hp)),         # conv GLU half a
                wspec((L, K * Hp, Hp)), wspec((L, 1, Hp)),         # conv GLU half b
                wspec((Hp, Ep)), wspec((1, Ep)),                   # attn_hidtoemb
                wspec((Ep, Hp)), wspec((1, Hp)),                   # attn_embtohid
                wspec((Hp, Ep)), wspec((1, Ep)),                   # hidtoemb
            ],
            out_specs=pl.BlockSpec((NB, Tp, Ep), lambda b: (b, 0, 0)),
            scratch_shapes=[pltpu.VMEM((NB, PAD_ROWS + Tp, Hp), MXU_DTYPE)],
        ),
        compiler_params=pltpu.CompilerParams(
            dimension_semantics=("parallel",),
            vmem_limit_bytes=vmem1),
    )(embedded_p, ek, ev,
      prepared["w_e2h"], prepared["b_e2h"],
      prepared["wa"], prepared["ba"], prepared["wb"], prepared["bb"],
      prepared["w_he"], prepared["b_he"], prepared["w_eh"], prepared["b_eh"],
      prepared["w_h2e"], prepared["b_h2e"])

    # ----- fc_out: separate tiled matmul over (M tiles, vocab tiles) -----
    Mtot = B * Tp
    x2d = conved_e.reshape(Mtot, Ep)
    TM = _pick_tile(Mtot, 512, 8)
    TO = _pick_tile(Op, 1024, LANE)
    out_bytes = jnp.dtype(logits_dtype).itemsize
    vmem2 = _vmem_limit_bytes(
        2 * (TM * Ep + Ep * TO) * bf,
        2 * (TO * f4 + TM * TO * out_bytes),
    )
    # TODO(synk): emit bf16 logits (logits_dtype=jnp.bfloat16) if the downstream
    # loss/softmax tolerates it -- halves the dominant HBM writeback.
    logits = pl.pallas_call(
        _fc_out_kernel,
        out_shape=jax.ShapeDtypeStruct((Mtot, Op), logits_dtype),
        grid_spec=pltpu.PrefetchScalarGridSpec(
            num_scalar_prefetch=0,
            grid=(Mtot // TM, Op // TO),
            in_specs=[
                pl.BlockSpec((TM, Ep), lambda i, j: (i, 0)),
                pl.BlockSpec((Ep, TO), lambda i, j: (0, j)),
                pl.BlockSpec((1, TO), lambda i, j: (0, j)),
            ],
            out_specs=pl.BlockSpec((TM, TO), lambda i, j: (i, j)),
        ),
        compiler_params=pltpu.CompilerParams(
            dimension_semantics=("parallel", "parallel"),
            vmem_limit_bytes=vmem2),
    )(x2d, prepared["w_fc"], prepared["b_fc"])

    return logits.reshape(B, Tp, Op)[:, :T, :O]


# ------------------------- pure-JAX f32 reference -------------------------- #
def decoder_reference(params, trg, enc_conved, enc_comb, K, pad_idx):
    B, T = trg.shape
    emb = params["tok_emb"][trg] + params["pos_emb"][jnp.arange(T)][None]
    x = emb @ params["w_embtohid"] + params["b_embtohid"]
    H = x.shape[-1]
    for layer in params["conv_layers"]:
        xp = jnp.concatenate(
            [jnp.full((B, K - 1, H), float(pad_idx), x.dtype), x], axis=1)
        co = jnp.zeros((B, T, 2 * H), jnp.float32)
        for j in range(K):
            co = co + jnp.einsum("bth,ho->bto", xp[:, j:j + T], layer["w_conv"][j])
        co = co + layer["b_conv"]
        conved = co[..., :H] * jax.nn.sigmoid(co[..., H:])
        ce = conved @ params["w_attn_hidtoemb"] + params["b_attn_hidtoemb"]
        comb = (ce + emb) * SCALE
        attn = jax.nn.softmax(jnp.einsum("bte,bse->bts", comb, enc_conved), axis=-1)
        ewa = jnp.einsum("bts,bse->bte", attn, enc_comb)
        ewa = ewa @ params["w_attn_embtohid"] + params["b_attn_embtohid"]
        conved = conved + ewa * SCALE
        x = (conved + x) * SCALE
    e = x @ params["w_hidtoemb"] + params["b_hidtoemb"]
    return e @ params["w_fc_out"] + params["b_fc_out"]


# ---------------------------------- main ------------------------------------ #
if __name__ == "__main__":
    # module hyper-params
    OUTPUT_DIM = 50
    EMB_DIM = 32
    HID_DIM = 32
    N_LAYERS = 2
    KERNEL_SIZE = 3
    TRG_PAD_IDX = 1
    MAX_LENGTH = 300

    # small example shapes
    B, T, S = 2, 8, 10

    key = jax.random.PRNGKey(0)
    ks = jax.random.split(key, 16)

    def rnd(k, shape):
        return (0.1 * jax.random.normal(k, shape)).astype(jnp.float32)

    params = {
        "tok_emb": rnd(ks[0], (OUTPUT_DIM, EMB_DIM)),
        "pos_emb": rnd(ks[1], (MAX_LENGTH, EMB_DIM)),
        "w_embtohid": rnd(ks[2], (EMB_DIM, HID_DIM)),
        "b_embtohid": rnd(ks[3], (HID_DIM,)),
        "w_hidtoemb": rnd(ks[4], (HID_DIM, EMB_DIM)),
        "b_hidtoemb": rnd(ks[5], (EMB_DIM,)),
        "w_attn_hidtoemb": rnd(ks[6], (HID_DIM, EMB_DIM)),
        "b_attn_hidtoemb": rnd(ks[7], (EMB_DIM,)),
        "w_attn_embtohid": rnd(ks[8], (EMB_DIM, HID_DIM)),
        "b_attn_embtohid": rnd(ks[9], (HID_DIM,)),
        "w_fc_out": rnd(ks[10], (EMB_DIM, OUTPUT_DIM)),
        "b_fc_out": rnd(ks[11], (OUTPUT_DIM,)),
        "conv_layers": [
            {
                "w_conv": rnd(jax.random.fold_in(ks[12], i),
                              (KERNEL_SIZE, HID_DIM, 2 * HID_DIM)),
                "b_conv": rnd(jax.random.fold_in(ks[13], i), (2 * HID_DIM,)),
            }
            for i in range(N_LAYERS)
        ],
    }

    trg = jax.random.randint(ks[14], (B, T), 0, OUTPUT_DIM, dtype=jnp.int32)
    ek_enc, ek_cmb = jax.random.split(ks[15])
    encoder_conved = rnd(ek_enc, (B, S, EMB_DIM))
    encoder_combined = rnd(ek_cmb, (B, S, EMB_DIM))

    # one-time weight preparation (hoisted out of the forward path)
    prepared, meta = prepare_decoder_params(params, KERNEL_SIZE)
    prepared = jax.tree_util.tree_map(jax.block_until_ready, prepared)

    out = decoder_forward(prepared, meta, trg, encoder_conved, encoder_combined,
                          TRG_PAD_IDX)
    out = jax.block_until_ready(out)

    ref = decoder_reference(params, trg, encoder_conved, encoder_combined,
                            KERNEL_SIZE, TRG_PAD_IDX)
    assert out.shape == (B, T, OUTPUT_DIM)
    # bf16 MXU operands / bf16 inter-kernel activation + approx reciprocal
    # -> slightly relaxed tolerance vs the f32 reference
    assert jnp.allclose(out, ref, atol=2e-2, rtol=2e-2), (
        "mismatch vs reference, max abs err = %e"
        % float(jnp.max(jnp.abs(out - ref))))

    print("KERNEL_OK")
</pallas_src>

<mosaic_0001>
module attributes {stable_mosaic.version = 11 : i64} {
  func.func @_decoder_layers_kernel(%arg0: i32, %arg1: memref<2x8x128xbf16, #tpu.memory_space<vmem>>, %arg2: memref<2x128x128xbf16, #tpu.memory_space<vmem>>, %arg3: memref<2x128x128xbf16, #tpu.memory_space<vmem>>, %arg4: memref<128x128xbf16, #tpu.memory_space<vmem>>, %arg5: memref<1x128xf32, #tpu.memory_space<vmem>>, %arg6: memref<2x384x128xbf16, #tpu.memory_space<vmem>>, %arg7: memref<2x1x128xf32, #tpu.memory_space<vmem>>, %arg8: memref<2x384x128xbf16, #tpu.memory_space<vmem>>, %arg9: memref<2x1x128xf32, #tpu.memory_space<vmem>>, %arg10: memref<128x128xbf16, #tpu.memory_space<vmem>>, %arg11: memref<1x128xf32, #tpu.memory_space<vmem>>, %arg12: memref<128x128xbf16, #tpu.memory_space<vmem>>, %arg13: memref<1x128xf32, #tpu.memory_space<vmem>>, %arg14: memref<128x128xbf16, #tpu.memory_space<vmem>>, %arg15: memref<1x128xf32, #tpu.memory_space<vmem>>, %arg16: memref<2x8x128xbf16, #tpu.memory_space<vmem>>, %arg17: memref<2x16x128xbf16, #tpu.memory_space<vmem>>) attributes {dimension_semantics = [#tpu.dimension_semantics<parallel>], iteration_bounds = array<i64: 1>, scalar_prefetch = 0 : i64, scratch_operands = 1 : i64, tpu.core_type = #tpu.core_type<tc>, window_params = [{transform_indices = @transform_0, window_bounds = array<i64: 2, 8, 128>}, {transform_indices = @transform_1, window_bounds = array<i64: 2, 128, 128>}, {transform_indices = @transform_2, window_bounds = array<i64: 2, 128, 128>}, {pipeline_mode = #tpu.pipeline_mode<synchronous>, transform_indices = @transform_3, window_bounds = array<i64: 128, 128>}, {pipeline_mode = #tpu.pipeline_mode<synchronous>, transform_indices = @transform_4, window_bounds = array<i64: 1, 128>}, {pipeline_mode = #tpu.pipeline_mode<synchronous>, transform_indices = @transform_5, window_bounds = array<i64: 2, 384, 128>}, {pipeline_mode = #tpu.pipeline_mode<synchronous>, transform_indices = @transform_6, window_bounds = array<i64: 2, 1, 128>}, {pipeline_mode = #tpu.pipeline_mode<synchronous>, transform_indices = @transform_7, window_bounds = array<i64: 2, 384, 128>}, {pipeline_mode = #tpu.pipeline_mode<synchronous>, transform_indices = @transform_8, window_bounds = array<i64: 2, 1, 128>}, {pipeline_mode = #tpu.pipeline_mode<synchronous>, transform_indices = @transform_9, window_bounds = array<i64: 128, 128>}, {pipeline_mode = #tpu.pipeline_mode<synchronous>, transform_indices = @transform_10, window_bounds = array<i64: 1, 128>}, {pipeline_mode = #tpu.pipeline_mode<synchronous>, transform_indices = @transform_11, window_bounds = array<i64: 128, 128>}, {pipeline_mode = #tpu.pipeline_mode<synchronous>, transform_indices = @transform_12, window_bounds = array<i64: 1, 128>}, {pipeline_mode = #tpu.pipeline_mode<synchronous>, transform_indices = @transform_13, window_bounds = array<i64: 128, 128>}, {pipeline_mode = #tpu.pipeline_mode<synchronous>, transform_indices = @transform_14, window_bounds = array<i64: 1, 128>}, {transform_indices = @transform_15, window_bounds = array<i64: 2, 8, 128>}]} {
    %c0 = arith.constant 0 : index
    %c0_0 = arith.constant 0 : index
    %c0_1 = arith.constant 0 : index
    %0 = vector.load %arg1[%c0, %c0_0, %c0_1] : memref<2x8x128xbf16, #tpu.memory_space<vmem>>, vector<2x8x128xbf16>
    %1 = vector.shape_cast %0 : vector<2x8x128xbf16> to vector<16x128xbf16>
    %c0_2 = arith.constant 0 : index
    %c0_3 = arith.constant 0 : index
    %c0_4 = arith.constant 0 : index
    %2 = vector.load %arg2[%c0_2, %c0_3, %c0_4] : memref<2x128x128xbf16, #tpu.memory_space<vmem>>, vector<2x128x128xbf16>
    %c0_5 = arith.constant 0 : index
    %c0_6 = arith.constant 0 : index
    %c0_7 = arith.constant 0 : index
    %3 = vector.load %arg3[%c0_5, %c0_6, %c0_7] : memref<2x128x128xbf16, #tpu.memory_space<vmem>>, vector<2x128x128xbf16>
    %c0_8 = arith.constant 0 : index
    %c0_9 = arith.constant 0 : index
    %4 = vector.load %arg4[%c0_8, %c0_9] : memref<128x128xbf16, #tpu.memory_space<vmem>>, vector<128x128xbf16>
    %cst = arith.constant dense<0.000000e+00> : vector<16x128xf32>
    %5 = tpu.matmul %1, %4, %cst {dimension_numbers = #tpu.dot_dimension_numbers<[1], [0], [0], [1], [0, 0, 1, 1], [], []>} : vector<16x128xbf16>, vector<128x128xbf16>, vector<16x128xf32> -> vector<16x128xf32>
    %c0_10 = arith.constant 0 : index
    %c0_11 = arith.constant 0 : index
    %6 = vector.load %arg5[%c0_10, %c0_11] : memref<1x128xf32, #tpu.memory_space<vmem>>, vector<1x128xf32>
    %7 = vector.broadcast %6 : vector<1x128xf32> to vector<16x128xf32>
    %8 = arith.addf %5, %7 : vector<16x128xf32>
    %cst_12 = arith.constant 1.000000e+00 : bf16
    %9 = vector.broadcast %cst_12 : bf16 to vector<2x8x128xbf16>
    %c0_13 = arith.constant 0 : index
    %c0_14 = arith.constant 0 : index
    %c0_15 = arith.constant 0 : index
    %10 = vector.load %arg17[%c0_13, %c0_14, %c0_15] : memref<2x16x128xbf16, #tpu.memory_space<vmem>>, vector<2x8x128xbf16>
    tpu.vector_store %arg17[%c0_13, %c0_14, %c0_15], %9 {strides = array<i32>} : memref<2x16x128xbf16, #tpu.memory_space<vmem>>, vector<2x8x128xbf16>,
    %11 = tpu.iota {dimensions = array<i32: 2>} : vector<2x8x128xi32>
    %c10_i32 = arith.constant 10 : i32
    %12 = vector.broadcast %c10_i32 : i32 to vector<2x8x128xi32>
    %13 = arith.cmpi slt, %11, %12 : vector<2x8x128xi32>
    %14 = vector.shape_cast %8 : vector<16x128xf32> to vector<2x8x128xf32>
    %15 = arith.truncf %14 : vector<2x8x128xf32> to vector<2x8x128xbf16>
    %c0_16 = arith.constant 0 : index
    %c8 = arith.constant 8 : index
    %c0_17 = arith.constant 0 : index
    %16 = vector.load %arg17[%c0_16, %c8, %c0_17] : memref<2x16x128xbf16, #tpu.memory_space<vmem>>, vector<2x8x128xbf16>
    tpu.vector_store %arg17[%c0_16, %c8, %c0_17], %15 {strides = array<i32>} : memref<2x16x128xbf16, #tpu.memory_space<vmem>>, vector<2x8x128xbf16>,
    %c0_18 = arith.constant 0 : index
    %c0_19 = arith.constant 0 : index
    %c0_20 = arith.constant 0 : index
    %17 = vector.load %arg17[%c0_18, %c0_19, %c0_20] : memref<2x16x128xbf16, #tpu.memory_space<vmem>>, vector<2x16x128xbf16>
    %18 = vector.extract_strided_slice %17 {offsets = [0, 6, 0], sizes = [2, 8, 128], strides = [1, 1, 1]} : vector<2x16x128xbf16> to vector<2x8x128xbf16>
    %19 = vector.extract_strided_slice %17 {offsets = [0, 7, 0], sizes = [2, 8, 128], strides = [1, 1, 1]} : vector<2x16x128xbf16> to vector<2x8x128xbf16>
    %20 = vector.extract_strided_slice %17 {offsets = [0, 8, 0], sizes = [2, 8, 128], strides = [1, 1, 1]} : vector<2x16x128xbf16> to vector<2x8x128xbf16>
    %21 = tpu.concatenate %18, %19, %20 in 2 : vector<2x8x128xbf16>, vector<2x8x128xbf16>, vector<2x8x128xbf16> -> vector<2x8x384xbf16>
    %22 = vector.shape_cast %21 : vector<2x8x384xbf16> to vector<16x384xbf16>
    %c0_21 = arith.constant 0 : index
    %c0_22 = arith.constant 0 : index
    %c0_23 = arith.constant 0 : index
    %23 = vector.load %arg6[%c0_21, %c0_22, %c0_23] : memref<2x384x128xbf16, #tpu.memory_space<vmem>>, vector<1x384x128xbf16>
    %24 = vector.shape_cast %23 : vector<1x384x128xbf16> to vector<384x128xbf16>
    %cst_24 = arith.constant dense<0.000000e+00> : vector<16x128xf32>
    %25 = tpu.matmul %22, %24, %cst_24 {dimension_numbers = #tpu.dot_dimension_numbers<[1], [0], [0], [1], [0, 0, 1, 1], [], []>} : vector<16x384xbf16>, vector<384x128xbf16>, vector<16x128xf32> -> vector<16x128xf32>
    %c0_25 = arith.constant 0 : index
    %c0_26 = arith.constant 0 : index
    %c0_27 = arith.constant 0 : index
    %26 = vector.load %arg7[%c0_25, %c0_26, %c0_27] : memref<2x1x128xf32, #tpu.memory_space<vmem>>, vector<1x1x128xf32>
    %27 = vector.shape_cast %26 : vector<1x1x128xf32> to vector<1x128xf32>
    %28 = vector.broadcast %27 : vector<1x128xf32> to vector<16x128xf32>
    %29 = arith.addf %25, %28 : vector<16x128xf32>
    %c0_28 = arith.constant 0 : index
    %c0_29 = arith.constant 0 : index
    %c0_30 = arith.constant 0 : index
    %30 = vector.load %arg8[%c0_28, %c0_29, %c0_30] : memref<2x384x128xbf16, #tpu.memory_space<vmem>>, vector<1x384x128xbf16>
    %31 = vector.shape_cast %30 : vector<1x384x128xbf16> to vector<384x128xbf16>
    %cst_31 = arith.constant dense<0.000000e+00> : vector<16x128xf32>
    %32 = tpu.matmul %22, %31, %cst_31 {dimension_numbers = #tpu.dot_dimension_numbers<[1], [0], [0], [1], [0, 0, 1, 1], [], []>} : vector<16x384xbf16>, vector<384x128xbf16>, vector<16x128xf32> -> vector<16x128xf32>
    %c0_32 = arith.constant 0 : index
    %c0_33 = arith.constant 0 : index
    %c0_34 = arith.constant 0 : index
    %33 = vector.load %arg9[%c0_32, %c0_33, %c0_34] : memref<2x1x128xf32, #tpu.memory_space<vmem>>, vector<1x1x128xf32>
    %34 = vector.shape_cast %33 : vector<1x1x128xf32> to vector<1x128xf32>
    %35 = vector.broadcast %34 : vector<1x128xf32> to vector<16x128xf32>
    %36 = arith.addf %32, %35 : vector<16x128xf32>
    %37 = arith.negf %36 : vector<16x128xf32>
    %38 = math.exp %37 : vector<16x128xf32>
    %cst_35 = arith.constant 1.000000e+00 : f32
    %39 = vector.broadcast %cst_35 : f32 to vector<16x128xf32>
    %40 = arith.addf %39, %38 : vector<16x128xf32>
    %41 = arith.divf %39, %40 : vector<16x128xf32>
    %42 = arith.mulf %29, %41 : vector<16x128xf32>
    %43 = arith.truncf %42 : vector<16x128xf32> to vector<16x128xbf16>
    %c0_36 = arith.constant 0 : index
    %c0_37 = arith.constant 0 : index
    %44 = vector.load %arg10[%c0_36, %c0_37] : memref<128x128xbf16, #tpu.memory_space<vmem>>, vector<128x128xbf16>
    %cst_38 = arith.constant dense<0.000000e+00> : vector<16x128xf32>
    %45 = tpu.matmul %43, %44, %cst_38 {dimension_numbers = #tpu.dot_dimension_numbers<[1], [0], [0], [1], [0, 0, 1, 1], [], []>} : vector<16x128xbf16>, vector<128x128xbf16>, vector<16x128xf32> -> vector<16x128xf32>
    %c0_39 = arith.constant 0 : index
    %c0_40 = arith.constant 0 : index
    %46 = vector.load %arg11[%c0_39, %c0_40] : memref<1x128xf32, #tpu.memory_space<vmem>>, vector<1x128xf32>
    %47 = vector.broadcast %46 : vector<1x128xf32> to vector<16x128xf32>
    %48 = arith.addf %45, %47 : vector<16x128xf32>
    %49 = arith.extf %1 : vector<16x128xbf16> to vector<16x128xf32>
    %50 = arith.addf %48, %49 : vector<16x128xf32>
    %cst_41 = arith.constant 0.707106769 : f32
    %51 = vector.broadcast %cst_41 : f32 to vector<16x128xf32>
    %52 = arith.mulf %50, %51 : vector<16x128xf32>
    %53 = arith.truncf %52 : vector<16x128xf32> to vector<16x128xbf16>
    %54 = vector.shape_cast %53 : vector<16x128xbf16> to vector<2x8x128xbf16>
    "tpu.trace_start"() <{level = 10 : i32, message = "bte,bse->bts"}> : () -> ()
    %cst_42 = arith.constant dense<0.000000e+00> : vector<2x8x128xf32>
    %55 = tpu.matmul %54, %2, %cst_42 {dimension_numbers = #tpu.dot_dimension_numbers<[2], [2], [1], [1], [0, 0, 0, 1, 1, 1], [0], [0]>} : vector<2x8x128xbf16>, vector<2x128x128xbf16>, vector<2x8x128xf32> -> vector<2x8x128xf32>
    %cst_43 = arith.constant -1.000000e+30 : f32
    "tpu.trace_stop"() : () -> ()
    %56 = vector.broadcast %cst_43 : f32 to vector<2x8x128xf32>
    %57 = arith.select %13, %55, %56 : vector<2x8x128xi1>, vector<2x8x128xf32>
    %cst_44 = arith.constant dense<0xFF800000> : vector<2x8xf32>
    %58 = vector.multi_reduction <maximumf>, %57, %cst_44 [2] : vector<2x8x128xf32> to vector<2x8xf32>
    %59 = vector.shape_cast %58 : vector<2x8xf32> to vector<2x8x1xf32>
    %60 = vector.broadcast %59 : vector<2x8x1xf32> to vector<2x8x128xf32>
    %61 = arith.subf %57, %60 : vector<2x8x128xf32>
    %62 = math.exp %61 : vector<2x8x128xf32>
    %cst_45 = arith.constant dense<0.000000e+00> : vector<2x8xf32>
    %63 = vector.multi_reduction <add>, %62, %cst_45 [2] : vector<2x8x128xf32> to vector<2x8xf32>
    %64 = vector.shape_cast %63 : vector<2x8xf32> to vector<2x8x1xf32>
    %65 = tpu.reciprocal %64 {approx = true} : vector<2x8x1xf32> -> vector<2x8x1xf32>
    %66 = vector.broadcast %65 : vector<2x8x1xf32> to vector<2x8x128xf32>
    %67 = arith.mulf %62, %66 : vector<2x8x128xf32>
    %68 = arith.truncf %67 : vector<2x8x128xf32> to vector<2x8x128xbf16>
    "tpu.trace_start"() <{level = 10 : i32, message = "bts,bse->bte"}> : () -> ()
    %cst_46 = arith.constant dense<0.000000e+00> : vector<2x8x128xf32>
    %69 = tpu.matmul %68, %3, %cst_46 {dimension_numbers = #tpu.dot_dimension_numbers<[2], [1], [1], [2], [0, 0, 0, 1, 1, 2], [0], [0]>} : vector<2x8x128xbf16>, vector<2x128x128xbf16>, vector<2x8x128xf32> -> vector<2x8x128xf32>
    "tpu.trace_stop"() : () -> ()
    %70 = vector.shape_cast %69 : vector<2x8x128xf32> to vector<16x128xf32>
    %71 = arith.truncf %70 : vector<16x128xf32> to vector<16x128xbf16>
    %c0_47 = arith.constant 0 : index
    %c0_48 = arith.constant 0 : index
    %72 = vector.load %arg12[%c0_47, %c0_48] : memref<128x128xbf16, #tpu.memory_space<vmem>>, vector<128x128xbf16>
    %cst_49 = arith.constant dense<0.000000e+00> : vector<16x128xf32>
    %73 = tpu.matmul %71, %72, %cst_49 {dimension_numbers = #tpu.dot_dimension_numbers<[1], [0], [0], [1], [0, 0, 1, 1], [], []>} : vector<16x128xbf16>, vector<128x128xbf16>, vector<16x128xf32> -> vector<16x128xf32>
    %c0_50 = arith.constant 0 : index
    %c0_51 = arith.constant 0 : index
    %74 = vector.load %arg13[%c0_50, %c0_51] : memref<1x128xf32, #tpu.memory_space<vmem>>, vector<1x128xf32>
    %75 = vector.broadcast %74 : vector<1x128xf32> to vector<16x128xf32>
    %76 = arith.addf %73, %75 : vector<16x128xf32>
    %cst_52 = arith.constant 0.707106769 : f32
    %77 = vector.broadcast %cst_52 : f32 to vector<16x128xf32>
    %78 = arith.mulf %76, %77 : vector<16x128xf32>
    %79 = arith.addf %42, %78 : vector<16x128xf32>
    %80 = arith.addf %79, %8 : vector<16x128xf32>
    %cst_53 = arith.constant 0.707106769 : f32
    %81 = vector.broadcast %cst_53 : f32 to vector<16x128xf32>
    %82 = arith.mulf %80, %81 : vector<16x128xf32>
    %83 = vector.shape_cast %82 : vector<16x128xf32> to vector<2x8x128xf32>
    %84 = arith.truncf %83 : vector<2x8x128xf32> to vector<2x8x128xbf16>
    %c0_54 = arith.constant 0 : index
    %c8_55 = arith.constant 8 : index
    %c0_56 = arith.constant 0 : index
    %85 = vector.load %arg17[%c0_54, %c8_55, %c0_56] : memref<2x16x128xbf16, #tpu.memory_space<vmem>>, vector<2x8x128xbf16>
    tpu.vector_store %arg17[%c0_54, %c8_55, %c0_56], %84 {strides = array<i32>} : memref<2x16x128xbf16, #tpu.memory_space<vmem>>, vector<2x8x128xbf16>,
    %c0_57 = arith.constant 0 : index
    %c0_58 = arith.constant 0 : index
    %c0_59 = arith.constant 0 : index
    %86 = vector.load %arg17[%c0_57, %c0_58, %c0_59] : memref<2x16x128xbf16, #tpu.memory_space<vmem>>, vector<2x16x128xbf16>
    %87 = vector.extract_strided_slice %86 {offsets = [0, 6, 0], sizes = [2, 8, 128], strides = [1, 1, 1]} : vector<2x16x128xbf16> to vector<2x8x128xbf16>
    %88 = vector.extract_strided_slice %86 {offsets = [0, 7, 0], sizes = [2, 8, 128], strides = [1, 1, 1]} : vector<2x16x128xbf16> to vector<2x8x128xbf16>
    %89 = vector.extract_strided_slice %86 {offsets = [0, 8, 0], sizes = [2, 8, 128], strides = [1, 1, 1]} : vector<2x16x128xbf16> to vector<2x8x128xbf16>
    %90 = tpu.concatenate %87, %88, %89 in 2 : vector<2x8x128xbf16>, vector<2x8x128xbf16>, vector<2x8x128xbf16> -> vector<2x8x384xbf16>
    %91 = vector.shape_cast %90 : vector<2x8x384xbf16> to vector<16x384xbf16>
    %c1 = arith.constant 1 : index
    %c0_60 = arith.constant 0 : index
    %c0_61 = arith.constant 0 : index
    %92 = vector.load %arg6[%c1, %c0_60, %c0_61] : memref<2x384x128xbf16, #tpu.memory_space<vmem>>, vector<1x384x128xbf16>
    %93 = vector.shape_cast %92 : vector<1x384x128xbf16> to vector<384x128xbf16>
    %cst_62 = arith.constant dense<0.000000e+00> : vector<16x128xf32>
    %94 = tpu.matmul %91, %93, %cst_62 {dimension_numbers = #tpu.dot_dimension_numbers<[1], [0], [0], [1], [0, 0, 1, 1], [], []>} : vector<16x384xbf16>, vector<384x128xbf16>, vector<16x128xf32> -> vector<16x128xf32>
    %c1_63 = arith.constant 1 : index
    %c0_64 = arith.constant 0 : index
    %c0_65 = arith.constant 0 : index
    %95 = vector.load %arg7[%c1_63, %c0_64, %c0_65] : memref<2x1x128xf32, #tpu.memory_space<vmem>>, vector<1x1x128xf32>
    %96 = vector.shape_cast %95 : vector<1x1x128xf32> to vector<1x128xf32>
    %97 = vector.broadcast %96 : vector<1x128xf32> to vector<16x128xf32>
    %98 = arith.addf %94, %97 : vector<16x128xf32>
    %c1_66 = arith.constant 1 : index
    %c0_67 = arith.constant 0 : index
    %c0_68 = arith.constant 0 : index
    %99 = vector.load %arg8[%c1_66, %c0_67, %c0_68] : memref<2x384x128xbf16, #tpu.memory_space<vmem>>, vector<1x384x128xbf16>
    %100 = vector.shape_cast %99 : vector<1x384x128xbf16> to vector<384x128xbf16>
    %cst_69 = arith.constant dense<0.000000e+00> : vector<16x128xf32>
    %101 = tpu.matmul %91, %100, %cst_69 {dimension_numbers = #tpu.dot_dimension_numbers<[1], [0], [0], [1], [0, 0, 1, 1], [], []>} : vector<16x384xbf16>, vector<384x128xbf16>, vector<16x128xf32> -> vector<16x128xf32>
    %c1_70 = arith.constant 1 : index
    %c0_71 = arith.constant 0 : index
    %c0_72 = arith.constant 0 : index
    %102 = vector.load %arg9[%c1_70, %c0_71, %c0_72] : memref<2x1x128xf32, #tpu.memory_space<vmem>>, vector<1x1x128xf32>
    %103 = vector.shape_cast %102 : vector<1x1x128xf32> to vector<1x128xf32>
    %104 = vector.broadcast %103 : vector<1x128xf32> to vector<16x128xf32>
    %105 = arith.addf %101, %104 : vector<16x128xf32>
    %106 = arith.negf %105 : vector<16x128xf32>
    %107 = math.exp %106 : vector<16x128xf32>
    %cst_73 = arith.constant 1.000000e+00 : f32
    %108 = vector.broadcast %cst_73 : f32 to vector<16x128xf32>
    %109 = arith.addf %108, %107 : vector<16x128xf32>
    %110 = arith.divf %108, %109 : vector<16x128xf32>
    %111 = arith.mulf %98, %110 : vector<16x128xf32>
    %112 = arith.truncf %111 : vector<16x128xf32> to vector<16x128xbf16>
    %c0_74 = arith.constant 0 : index
    %c0_75 = arith.constant 0 : index
    %113 = vector.load %arg10[%c0_74, %c0_75] : memref<128x128xbf16, #tpu.memory_space<vmem>>, vector<128x128xbf16>
    %cst_76 = arith.constant dense<0.000000e+00> : vector<16x128xf32>
    %114 = tpu.matmul %112, %113, %cst_76 {dimension_numbers = #tpu.dot_dimension_numbers<[1], [0], [0], [1], [0, 0, 1, 1], [], []>} : vector<16x128xbf16>, vector<128x128xbf16>, vector<16x128xf32> -> vector<16x128xf32>
    %c0_77 = arith.constant 0 : index
    %c0_78 = arith.constant 0 : index
    %115 = vector.load %arg11[%c0_77, %c0_78] : memref<1x128xf32, #tpu.memory_space<vmem>>, vector<1x128xf32>
    %116 = vector.broadcast %115 : vector<1x128xf32> to vector<16x128xf32>
    %117 = arith.addf %114, %116 : vector<16x128xf32>
    %118 = arith.extf %1 : vector<16x128xbf16> to vector<16x128xf32>
    %119 = arith.addf %117, %118 : vector<16x128xf32>
    %cst_79 = arith.constant 0.707106769 : f32
    %120 = vector.broadcast %cst_79 : f32 to vector<16x128xf32>
    %121 = arith.mulf %119, %120 : vector<16x128xf32>
    %122 = arith.truncf %121 : vector<16x128xf32> to vector<16x128xbf16>
    %123 = vector.shape_cast %122 : vector<16x128xbf16> to vector<2x8x128xbf16>
    "tpu.trace_start"() <{level = 10 : i32, message = "bte,bse->bts"}> : () -> ()
    %cst_80 = arith.constant dense<0.000000e+00> : vector<2x8x128xf32>
    %124 = tpu.matmul %123, %2, %cst_80 {dimension_numbers = #tpu.dot_dimension_numbers<[2], [2], [1], [1], [0, 0, 0, 1, 1, 1], [0], [0]>} : vector<2x8x128xbf16>, vector<2x128x128xbf16>, vector<2x8x128xf32> -> vector<2x8x128xf32>
    %cst_81 = arith.constant -1.000000e+30 : f32
    "tpu.trace_stop"() : () -> ()
    %125 = vector.broadcast %cst_81 : f32 to vector<2x8x128xf32>
    %126 = arith.select %13, %124, %125 : vector<2x8x128xi1>, vector<2x8x128xf32>
    %cst_82 = arith.constant dense<0xFF800000> : vector<2x8xf32>
    %127 = vector.multi_reduction <maximumf>, %126, %cst_82 [2] : vector<2x8x128xf32> to vector<2x8xf32>
    %128 = vector.shape_cast %127 : vector<2x8xf32> to vector<2x8x1xf32>
    %129 = vector.broadcast %128 : vector<2x8x1xf32> to vector<2x8x128xf32>
    %130 = arith.subf %126, %129 : vector<2x8x128xf32>
    %131 = math.exp %130 : vector<2x8x128xf32>
    %cst_83 = arith.constant dense<0.000000e+00> : vector<2x8xf32>
    %132 = vector.multi_reduction <add>, %131, %cst_83 [2] : vector<2x8x128xf32> to vector<2x8xf32>
    %133 = vector.shape_cast %132 : vector<2x8xf32> to vector<2x8x1xf32>
    %134 = tpu.reciprocal %133 {approx = true} : vector<2x8x1xf32> -> vector<2x8x1xf32>
    %135 = vector.broadcast %134 : vector<2x8x1xf32> to vector<2x8x128xf32>
    %136 = arith.mulf %131, %135 : vector<2x8x128xf32>
    %137 = arith.truncf %136 : vector<2x8x128xf32> to vector<2x8x128xbf16>
    "tpu.trace_start"() <{level = 10 : i32, message = "bts,bse->bte"}> : () -> ()
    %cst_84 = arith.constant dense<0.000000e+00> : vector<2x8x128xf32>
    %138 = tpu.matmul %137, %3, %cst_84 {dimension_numbers = #tpu.dot_dimension_numbers<[2], [1], [1], [2], [0, 0, 0, 1, 1, 2], [0], [0]>} : vector<2x8x128xbf16>, vector<2x128x128xbf16>, vector<2x8x128xf32> -> vector<2x8x128xf32>
    "tpu.trace_stop"() : () -> ()
    %139 = vector.shape_cast %138 : vector<2x8x128xf32> to vector<16x128xf32>
    %140 = arith.truncf %139 : vector<16x128xf32> to vector<16x128xbf16>
    %c0_85 = arith.constant 0 : index
    %c0_86 = arith.constant 0 : index
    %141 = vector.load %arg12[%c0_85, %c0_86] : memref<128x128xbf16, #tpu.memory_space<vmem>>, vector<128x128xbf16>
    %cst_87 = arith.constant dense<0.000000e+00> : vector<16x128xf32>
    %142 = tpu.matmul %140, %141, %cst_87 {dimension_numbers = #tpu.dot_dimension_numbers<[1], [0], [0], [1], [0, 0, 1, 1], [], []>} : vector<16x128xbf16>, vector<128x128xbf16>, vector<16x128xf32> -> vector<16x128xf32>
    %c0_88 = arith.constant 0 : index
    %c0_89 = arith.constant 0 : index
    %143 = vector.load %arg13[%c0_88, %c0_89] : memref<1x128xf32, #tpu.memory_space<vmem>>, vector<1x128xf32>
    %144 = vector.broadcast %143 : vector<1x128xf32> to vector<16x128xf32>
    %145 = arith.addf %142, %144 : vector<16x128xf32>
    %cst_90 = arith.constant 0.707106769 : f32
    %146 = vector.broadcast %cst_90 : f32 to vector<16x128xf32>
    %147 = arith.mulf %145, %146 : vector<16x128xf32>
    %148 = arith.addf %111, %147 : vector<16x128xf32>
    %149 = arith.addf %148, %82 : vector<16x128xf32>
    %cst_91 = arith.constant 0.707106769 : f32
    %150 = vector.broadcast %cst_91 : f32 to vector<16x128xf32>
    %151 = arith.mulf %149, %150 : vector<16x128xf32>
    %152 = arith.truncf %151 : vector<16x128xf32> to vector<16x128xbf16>
    %c0_92 = arith.constant 0 : index
    %c0_93 = arith.constant 0 : index
    %153 = vector.load %arg14[%c0_92, %c0_93] : memref<128x128xbf16, #tpu.memory_space<vmem>>, vector<128x128xbf16>
    %cst_94 = arith.constant dense<0.000000e+00> : vector<16x128xf32>
    %154 = tpu.matmul %152, %153, %cst_94 {dimension_numbers = #tpu.dot_dimension_numbers<[1], [0], [0], [1], [0, 0, 1, 1], [], []>} : vector<16x128xbf16>, vector<128x128xbf16>, vector<16x128xf32> -> vector<16x128xf32>
    %c0_95 = arith.constant 0 : index
    %c0_96 = arith.constant 0 : index
    %155 = vector.load %arg15[%c0_95, %c0_96] : memref<1x128xf32, #tpu.memory_space<vmem>>, vector<1x128xf32>
    %156 = vector.broadcast %155 : vector<1x128xf32> to vector<16x128xf32>
    %157 = arith.addf %154, %156 : vector<16x128xf32>
    %158 = vector.shape_cast %157 : vector<16x128xf32> to vector<2x8x128xf32>
    %159 = arith.truncf %158 : vector<2x8x128xf32> to vector<2x8x128xbf16>
    %c0_97 = arith.constant 0 : index
    %c0_98 = arith.constant 0 : index
    %c0_99 = arith.constant 0 : index
    %160 = vector.load %arg16[%c0_97, %c0_98, %c0_99] : memref<2x8x128xbf16, #tpu.memory_space<vmem>>, vector<2x8x128xbf16>
    tpu.vector_store %arg16[%c0_97, %c0_98, %c0_99], %159 {strides = array<i32>} : memref<2x8x128xbf16, #tpu.memory_space<vmem>>, vector<2x8x128xbf16>,
    return
  }
  func.func @transform_0(%arg0: i32) -> (i32, i32, i32) {
    %c0_i32 = arith.constant 0 : i32
    %c0_i32_0 = arith.constant 0 : i32
    %c0_i32_1 = arith.constant 0 : i32
    return %arg0, %c0_i32, %c0_i32_0 : i32, i32, i32
  }
  func.func @transform_1(%arg0: i32) -> (i32, i32, i32) {
    %c0_i32 = arith.constant 0 : i32
    %c0_i32_0 = arith.constant 0 : i32
    %c0_i32_1 = arith.constant 0 : i32
    return %arg0, %c0_i32, %c0_i32_0 : i32, i32, i32
  }
  func.func @transform_2(%arg0: i32) -> (i32, i32, i32) {
    %c0_i32 = arith.constant 0 : i32
    %c0_i32_0 = arith.constant 0 : i32
    %c0_i32_1 = arith.constant 0 : i32
    return %arg0, %c0_i32, %c0_i32_0 : i32, i32, i32
  }
  func.func @transform_3(%arg0: i32) -> (i32, i32) {
    %c0_i32 = arith.constant 0 : i32
    %c0_i32_0 = arith.constant 0 : i32
    %c0_i32_1 = arith.constant 0 : i32
    return %c0_i32, %c0_i32_0 : i32, i32
  }
  func.func @transform_4(%arg0: i32) -> (i32, i32) {
    %c0_i32 = arith.constant 0 : i32
    %c0_i32_0 = arith.constant 0 : i32
    %c0_i32_1 = arith.constant 0 : i32
    return %c0_i32, %c0_i32_0 : i32, i32
  }
  func.func @transform_5(%arg0: i32) -> (i32, i32, i32) {
    %c0_i32 = arith.constant 0 : i32
    %c0_i32_0 = arith.constant 0 : i32
    %c0_i32_1 = arith.constant 0 : i32
    %c0_i32_2 = arith.constant 0 : i32
    return %c0_i32, %c0_i32_0, %c0_i32_1 : i32, i32, i32
  }
  func.func @transform_6(%arg0: i32) -> (i32, i32, i32) {
    %c0_i32 = arith.constant 0 : i32
    %c0_i32_0 = arith.constant 0 : i32
    %c0_i32_1 = arith.constant 0 : i32
    %c0_i32_2 = arith.constant 0 : i32
    return %c0_i32, %c0_i32_0, %c0_i32_1 : i32, i32, i32
  }
  func.func @transform_7(%arg0: i32) -> (i32, i32, i32) {
    %c0_i32 = arith.constant 0 : i32
    %c0_i32_0 = arith.constant 0 : i32
    %c0_i32_1 = arith.constant 0 : i32
    %c0_i32_2 = arith.constant 0 : i32
    return %c0_i32, %c0_i32_0, %c0_i32_1 : i32, i32, i32
  }
  func.func @transform_8(%arg0: i32) -> (i32, i32, i32) {
    %c0_i32 = arith.constant 0 : i32
    %c0_i32_0 = arith.constant 0 : i32
    %c0_i32_1 = arith.constant 0 : i32
    %c0_i32_2 = arith.constant 0 : i32
    return %c0_i32, %c0_i32_0, %c0_i32_1 : i32, i32, i32
  }
  func.func @transform_9(%arg0: i32) -> (i32, i32) {
    %c0_i32 = arith.constant 0 : i32
    %c0_i32_0 = arith.constant 0 : i32
    %c0_i32_1 = arith.constant 0 : i32
    return %c0_i32, %c0_i32_0 : i32, i32
  }
  func.func @transform_10(%arg0: i32) -> (i32, i32) {
    %c0_i32 = arith.constant 0 : i32
    %c0_i32_0 = arith.constant 0 : i32
    %c0_i32_1 = arith.constant 0 : i32
    return %c0_i32, %c0_i32_0 : i32, i32
  }
  func.func @transform_11(%arg0: i32) -> (i32, i32) {
    %c0_i32 = arith.constant 0 : i32
    %c0_i32_0 = arith.constant 0 : i32
    %c0_i32_1 = arith.constant 0 : i32
    return %c0_i32, %c0_i32_0 : i32, i32
  }
  func.func @transform_12(%arg0: i32) -> (i32, i32) {
    %c0_i32 = arith.constant 0 : i32
    %c0_i32_0 = arith.constant 0 : i32
    %c0_i32_1 = arith.constant 0 : i32
    return %c0_i32, %c0_i32_0 : i32, i32
  }
  func.func @transform_13(%arg0: i32) -> (i32, i32) {
    %c0_i32 = arith.constant 0 : i32
    %c0_i32_0 = arith.constant 0 : i32
    %c0_i32_1 = arith.constant 0 : i32
    return %c0_i32, %c0_i32_0 : i32, i32
  }
  func.func @transform_14(%arg0: i32) -> (i32, i32) {
    %c0_i32 = arith.constant 0 : i32
    %c0_i32_0 = arith.constant 0 : i32
    %c0_i32_1 = arith.constant 0 : i32
    return %c0_i32, %c0_i32_0 : i32, i32
  }
  func.func @transform_15(%arg0: i32) -> (i32, i32, i32) {
    %c0_i32 = arith.constant 0 : i32
    %c0_i32_0 = arith.constant 0 : i32
    %c0_i32_1 = arith.constant 0 : i32
    return %arg0, %c0_i32, %c0_i32_0 : i32, i32, i32
  }
}

</mosaic_0001>

<bundles_post_ra>
// kernel: tpu_custom_call.1
= control target key start
LH: loop header
LB: loop body
LE: loop exit
PB: predicated region body
PF: predicated region fallthrough
CT: control target
= control target key end

     0   :  { %20 = vsyncpa [#allocation4], 0  ;;  %s4033_s0 = inlined_call_operand.hbm [shape: bf16[2,8,128], index: 0, kind: input, shape index: {}]   ;;  %s4034_s1 = inlined_call_operand.hbm [shape: bf16[2,128,128], index: 1, kind: input, shape index: {}]   ;;  %s4035_s2 = inlined_call_operand.hbm [shape: bf16[2,128,128], index: 2, kind: input, shape index: {}]   ;;  %s4036_s3 = inlined_call_operand.hbm [shape: bf16[128,128], index: 3, kind: input, shape index: {}]   ;;  %s4037_s4 = inlined_call_operand.hbm [shape: f32[1,128], index: 4, kind: input, shape index: {}]   ;;  %s4038_s5 = inlined_call_operand.hbm [shape: bf16[2,384,128], index: 5, kind: input, shape index: {}]   ;;  %s4039_s6 = inlined_call_operand.vmem [shape: f32[2,1,128], index: 6, kind: input, shape index: {}]   ;;  %s4040_s7 = inlined_call_operand.hbm [shape: bf16[2,384,128], index: 7, kind: input, shape index: {}]   ;;  %s4041_s8 = inlined_call_operand.vmem [shape: f32[2,1,128], index: 8, kind: input, shape index: {}]   ;;  %s4042_s9 = inlined_call_operand.hbm [shape: bf16[128,128], index: 9, kind: input, shape index: {}]   ;;  %s4043_s10 = inlined_call_operand.vmem [shape: f32[1,128], index: 10, kind: input, shape index: {}]   ;;  %s4044_s11 = inlined_call_operand.hbm [shape: bf16[128,128], index: 11, kind: input, shape index: {}]   ;;  %s4045_s12 = inlined_call_operand.vmem [shape: f32[1,128], index: 12, kind: input, shape index: {}]   ;;  %s4046_s13 = inlined_call_operand.hbm [shape: bf16[128,128], index: 13, kind: input, shape index: {}]   ;;  %s4047_s14 = inlined_call_operand.vmem [shape: f32[1,128], index: 14, kind: input, shape index: {}]   ;;  %s4048_s15 = inlined_call_operand.hbm [shape: bf16[2,8,128], index: 15, kind: output, shape index: {}]  }
   0x1   :  { %21 = vsyncpa [#allocation7], 0 }
   0x2   :  { %22 = vsyncpa [#allocation10], 0 }
   0x3   :  { %23 = vsyncpa [#allocation13], 0 }
   0x4   :  { %24 = vsyncpa [#allocation16], 0 }
   0x5   :  { %25 = vsyncpa [#allocation19], 0 }
   0x6   :  { %26 = vsyncpa [#allocation5], 0  ;;  %s44_s20 = sshll.u32 %s4034_s1, 4  ;;  %s3633_s21 = smov [#allocation6]   ;;  %s45_s20 = int_to_ptr.hbm [resolvable:$true] %s44_s20 }
   0x7   :  { %s46_s22 = sshll.u32 %s3633_s21, 4  ;;  %s70_s25 = sshll.u32 %s4036_s3, 4  ;;  %s47_s22 = int_to_ptr.vmem [resolvable:$true] %s46_s22  ;;  %s71_s25 = int_to_ptr.hbm [resolvable:$true] %s70_s25 }
   0x8   :  { %s3634_s26 = smov 64   ;;  %s3635_s27 = smov 4  }
   0x9   :  { %52 = dma.hbm_to_vmem [thread:$0]  %s45_s20, 2048, %s47_s22, [#allocation7], %s3634_s26, %s3634_s26, %s3635_s27  }
   0xa   :  { %s3636_s28 = smov [#allocation9]   ;;  %s94_s1 = sshll.u32 %s4038_s5, 4  ;;  %s95_s1 = int_to_ptr.hbm [resolvable:$true] %s94_s1 }
   0xb   :  { %s72_s29 = sshll.u32 %s3636_s28, 4  ;;  %s124_s18 = sshll.u32 %s4042_s9, 4  ;;  %s73_s29 = int_to_ptr.vmem [resolvable:$true] %s72_s29  ;;  %s125_s18 = int_to_ptr.hbm [resolvable:$true] %s124_s18 }
   0xc   :  { %78 = dma.hbm_to_vmem [thread:$0]  %s71_s25, 1024, %s73_s29, [#allocation10], %s3634_s26, %s3634_s26, %s3635_s27  }
   0xd   :  { %s3637_s19 = smov [#allocation12]   ;;  %s3638_s20 = smov [#allocation15]  }
   0xe   :  { %s96_s21 = sshll.u32 %s3637_s19, 4  ;;  %s126_s5 = sshll.u32 %s3638_s20, 4  ;;  %s97_s21 = int_to_ptr.vmem [resolvable:$true] %s96_s21  ;;  %s127_s5 = int_to_ptr.vmem [resolvable:$true] %s126_s5 }
   0xf   :  { %102 = dma.hbm_to_vmem [thread:$0]  %s95_s1, 6144, %s97_s21, [#allocation13], %s3634_s26, %s3634_s26, %s3635_s27  }
  0x10   :  { %s31_s24 = sshll.u32 %s4033_s0, 4  ;;  %s57_s28 = sshll.u32 %s4035_s2, 4  ;;  %s32_s24 = int_to_ptr.hbm [resolvable:$true] %s31_s24  ;;  %s58_s28 = int_to_ptr.hbm [resolvable:$true] %s57_s28 }
  0x11   :  { %132 = dma.hbm_to_vmem [thread:$0]  %s125_s18, 1024, %s127_s5, [#allocation16], %s3634_s26, %s3634_s26, %s3635_s27  }
  0x12   :  { %s3639_s29 = smov [#allocation3]   ;;  %s3640_s16 = smov [#allocation8]  }
  0x13   :  { %s33_s30 = sshll.u32 %s3639_s29, 4  ;;  %s59_s0 = sshll.u32 %s3640_s16, 4  ;;  %s34_s30 = int_to_ptr.vmem [resolvable:$true] %s33_s30  ;;  %s60_s0 = int_to_ptr.vmem [resolvable:$true] %s59_s0 }
  0x14   :  { %39 = dma.hbm_to_vmem [thread:$0]  %s32_s24, 128, %s34_s30, [#allocation4], %s3634_s26, %s3634_s26, %s3635_s27  }
  0x15   :  { %s84_s17 = sshll.u32 %s4037_s4, 4  ;;  %s109_s19 = sshll.u32 %s4040_s7, 4  ;;  %s85_s17 = int_to_ptr.hbm [resolvable:$true] %s84_s17  ;;  %s110_s19 = int_to_ptr.hbm [resolvable:$true] %s109_s19 }
  0x16   :  { %65 = dma.hbm_to_vmem [thread:$0]  %s58_s28, 2048, %s60_s0, [#allocation7], %s3634_s26, %s3634_s26, %s3635_s27  }
  0x17   :  { %s3641_s21 = smov [#allocation11]   ;;  %s3642_s5 = smov [#allocation14]  }
  0x18   :  { %s86_s20 = sshll.u32 %s3641_s21, 4  ;;  %s111_s22 = sshll.u32 %s3642_s5, 4  ;;  %s87_s20 = int_to_ptr.vmem [resolvable:$true] %s86_s20  ;;  %s112_s22 = int_to_ptr.vmem [resolvable:$true] %s111_s22 }
  0x19   :  { %89 = dma.hbm_to_vmem [thread:$0]  %s85_s17, 16, %s87_s20, [#allocation10]  }
  0x1a   :  { %s139_s4 = sshll.u32 %s4044_s11, 4  ;;  %s154_s7 = sshll.u32 %s4046_s13, 4  ;;  %s140_s4 = int_to_ptr.hbm [resolvable:$true] %s139_s4  ;;  %s155_s7 = int_to_ptr.hbm [resolvable:$true] %s154_s7 }
  0x1b   :  { %117 = dma.hbm_to_vmem [thread:$0]  %s110_s19, 6144, %s112_s22, [#allocation13], %s3634_s26, %s3634_s26, %s3635_s27  }
  0x1c   :  { %s3643_s28 = smov [#allocation17]   ;;  %s3644_s30 = smov [#allocation18]  }
  0x1d   :  { %s141_s29 = sshll.u32 %s3643_s28, 4  ;;  %s156_s11 = sshll.u32 %s3644_s30, 4  ;;  %s142_s29 = int_to_ptr.vmem [resolvable:$true] %s141_s29  ;;  %s157_s11 = int_to_ptr.vmem [resolvable:$true] %s156_s11 }
  0x1e   :  { %147 = dma.hbm_to_vmem [thread:$0]  %s140_s4, 1024, %s142_s29, [#allocation16], %s3634_s26, %s3634_s26, %s3635_s27  }
  0x1f   :  { %162 = dma.hbm_to_vmem [thread:$0]  %s155_s7, 1024, %s157_s11, [#allocation19], %s3634_s26, %s3634_s26, %s3635_s27  }
  0x20   :  { %3619 = dma.done.wait [#allocation4], 128  }
  0x21   :  { %3620 = vsyncadd [#allocation4], 4294967168 }
  0x22   :  { %3621 = dma.done.wait [#allocation7], 4096  }
  0x23   :  { %3622 = vsyncadd [#allocation7], 4294963200 }
  0x24   :  { %3623 = dma.done.wait [#allocation10], 1040  }
  0x25   :  { %3624 = vsyncadd [#allocation10], 4294966256 }
  0x26   :  { %3625 = dma.done.wait [#allocation13], 12288  }
  0x27   :  { %3626 = vsyncadd [#allocation13], 4294955008 }
  0x28   :  { %3627 = dma.done.wait [#allocation16], 2048  }
  0x29   :  { %3628 = vsyncadd [#allocation16], 4294965248 }
  0x2a   :  { %3629 = dma.done.wait [#allocation19], 1024  }
  0x2b   :  { %3630 = vsyncadd [#allocation19], 4294966272  ;;  %v3139_v0 = vld [vmem:[#allocation9 + $0x38] sm:$0xff]  ;;  %v3138_v1 = vld [vmem:[#allocation9 + $0x30] sm:$0xff]  ;;  %v3645_v19 = vmov 1065369472  }
  0x2c   :  { %346 = vmatpush.bf16.msra.mxu0 %v3139_v0  ;;  %v3147_v2 = vld [vmem:[#allocation12 + $0x38] sm:$0xff]  ;;  %v3137_v4 = vld [vmem:[#allocation9 + $0x28] sm:$0xff]  ;;  %v3146_v5 = vld [vmem:[#allocation12 + $0x30] sm:$0xff]  ;;  %360 = vst [vmem:[#allocation2] sm:$0xf] %v3645_v19  ;;  %vm417_vm0 = vcmask 1040384  }
  0x2d   :  { %v3155_v3 = vld [vmem:[#allocation12 + $0x78] sm:$0xff]  ;;  %v3154_v6 = vld [vmem:[#allocation12 + $0x70] sm:$0xff]  ;;  %644 = vmatpush.bf16.msra.mxu1 %v3147_v2  ;;  %v3133_v10 = vld [vmem:[#allocation9 + $0x8] sm:$0xff]  ;;  %361 = vst [vmem:[#allocation2 + $0x8] sm:$0xf] %v3645_v19  ;;  %vm418_vm1 = vcmask 1044484  }
  0x2e   :  { %658 = vmatpush.bf16.msra.mxu2 %v3155_v3  ;;  %v3136_v7 = vld [vmem:[#allocation9 + $0x20] sm:$0xff]  ;;  %v3135_v8 = vld [vmem:[#allocation9 + $0x18] sm:$0xff]  ;;  %v3134_v9 = vld [vmem:[#allocation9 + $0x10] sm:$0xff]  ;;  %s3646_s24 = smov [#allocation20]   ;;  %s2359_s7 = sshll.u32 %s4048_s15, 4  ;;  %s2360_s7 = int_to_ptr.hbm [resolvable:$true] %s2359_s7 }
  0x2f   :  { %v3132_v11 = vld [vmem:[#allocation9] sm:$0xff]  ;;  %v3099_v12 = vld [vmem:[#allocation3] sm:$0xff]  ;;  %v3145_v13 = vld [vmem:[#allocation12 + $0x28] sm:$0xff]  ;;  %s2357_s4 = sshll.u32 %s3646_s24, 4  ;;  %s2358_s4 = int_to_ptr.vmem [resolvable:$true] %s2357_s4 }
  0x30   :  { %347 = vmatpush.bf16.msra.mxu0 %v3138_v1  ;;  %v3153_v14 = vld [vmem:[#allocation12 + $0x68] sm:$0xff]  ;;  %v3144_v15 = vld [vmem:[#allocation12 + $0x20] sm:$0xff]  ;;  %v3163_v17 = vld [vmem:[#allocation12 + $0xb8] sm:$0xff] }
  0x31   :  { %645 = vmatpush.bf16.msra.mxu1 %v3146_v5  ;;  %v3152_v16 = vld [vmem:[#allocation12 + $0x60] sm:$0xff]  ;;  %v3171_v18 = vld [vmem:[#allocation14 + $0x38] sm:$0xff]  ;;  %672 = vmatpush.bf16.msra.mxu3 %v3163_v17  ;;  %v3162_v22 = vld [vmem:[#allocation12 + $0xb0] sm:$0xff] }
  0x32   :  { %659 = vmatpush.bf16.msra.mxu2 %v3154_v6  ;;  %v3143_v20 = vld [vmem:[#allocation12 + $0x18] sm:$0xff]  ;;  %v3170_v23 = vld [vmem:[#allocation14 + $0x30] sm:$0xff]  ;;  %v3161_v26 = vld [vmem:[#allocation12 + $0xa8] sm:$0xff] }
  0x33   :  { %v3151_v21 = vld [vmem:[#allocation12 + $0x58] sm:$0xff]  ;;  %v3142_v24 = vld [vmem:[#allocation12 + $0x10] sm:$0xff]  ;;  %v3169_v27 = vld [vmem:[#allocation14 + $0x28] sm:$0xff] }
  0x34   :  { %348 = vmatpush.bf16.msra.mxu0 %v3137_v4  ;;  %v3150_v25 = vld [vmem:[#allocation12 + $0x50] sm:$0xff]  ;;  %v3141_v28 = vld [vmem:[#allocation12 + $0x8] sm:$0xff]  ;;  %v3160_v30 = vld [vmem:[#allocation12 + $0xa0] sm:$0xff] }
  0x35   :  { %646 = vmatpush.bf16.msra.mxu1 %v3145_v13  ;;  %673 = vmatpush.bf16.msra.mxu3 %v3162_v22  ;;  %v3149_v29 = vld [vmem:[#allocation12 + $0x48] sm:$0xff]  ;;  %v3168_v31 = vld [vmem:[#allocation14 + $0x20] sm:$0xff]  ;;  %v3159_v34 = vld [vmem:[#allocation12 + $0x98] sm:$0xff] }
  0x36   :  { %660 = vmatpush.bf16.msra.mxu2 %v3153_v14  ;;  %v3140_v32 = vld [vmem:[#allocation12] sm:$0xff]  ;;  %v3167_v35 = vld [vmem:[#allocation14 + $0x18] sm:$0xff]  ;;  %v3158_v38 = vld [vmem:[#allocation12 + $0x90] sm:$0xff] }
  0x37   :  { %v3148_v33 = vld [vmem:[#allocation12 + $0x40] sm:$0xff]  ;;  %v3179_v36 = vld [vmem:[#allocation14 + $0x78] sm:$0xff]  ;;  %v3166_v39 = vld [vmem:[#allocation14 + $0x10] sm:$0xff] }
  0x38   :  { %349 = vmatpush.bf16.msra.mxu0 %v3136_v7  ;;  %v3187_v37 = vld [vmem:[#allocation14 + $0xb8] sm:$0xff]  ;;  %v3178_v40 = vld [vmem:[#allocation14 + $0x70] sm:$0xff]  ;;  %v3157_v42 = vld [vmem:[#allocation12 + $0x88] sm:$0xff] }
  0x39   :  { %647 = vmatpush.bf16.msra.mxu1 %v3144_v15  ;;  %674 = vmatpush.bf16.msra.mxu3 %v3161_v26  ;;  %v3186_v41 = vld [vmem:[#allocation14 + $0xb0] sm:$0xff]  ;;  %v3165_v43 = vld [vmem:[#allocation14 + $0x8] sm:$0xff]  ;;  %v3313_v46 = vld [vmem:[#allocation11] ss:$0 sm:$0xff] }
  0x3a   :  { %661 = vmatpush.bf16.msra.mxu2 %v3152_v16  ;;  %v3177_v44 = vld [vmem:[#allocation14 + $0x68] sm:$0xff]  ;;  %v3156_v47 = vld [vmem:[#allocation12 + $0x80] sm:$0xff]  ;;  %v3175_v54 = vld [vmem:[#allocation14 + $0x58] sm:$0xff] }
  0x3b   :  { %v3185_v45 = vld [vmem:[#allocation14 + $0xa8] sm:$0xff]  ;;  %v3164_v48 = vld [vmem:[#allocation14] sm:$0xff]  ;;  %v3183_v55 = vld [vmem:[#allocation14 + $0x98] sm:$0xff] }
  0x3c   :  { %350 = vmatpush.bf16.msra.mxu0 %v3135_v8  ;;  %v3176_v50 = vld [vmem:[#allocation14 + $0x60] sm:$0xff]  ;;  %v3174_v58 = vld [vmem:[#allocation14 + $0x50] sm:$0xff]  ;;  %v3173_v0 = vld [vmem:[#allocation14 + $0x48] sm:$0xff] }
  0x3d   :  { %648 = vmatpush.bf16.msra.mxu1 %v3143_v20  ;;  %675 = vmatpush.bf16.msra.mxu3 %v3160_v30  ;;  %v3184_v51 = vld [vmem:[#allocation14 + $0xa0] sm:$0xff]  ;;  %v3182_v59 = vld [vmem:[#allocation14 + $0x90] sm:$0xff]  ;;  %v3181_v1 = vld [vmem:[#allocation14 + $0x88] sm:$0xff] }
  0x3e   :  { %662 = vmatpush.bf16.msra.mxu2 %v3151_v21  ;;  %v3172_v7 = vld [vmem:[#allocation14 + $0x40] sm:$0xff]  ;;  %vm3792_vm2 = vmor %vm417_vm0, %vm418_vm1 }
  0x3f   :  { %v3180_v8 = vld [vmem:[#allocation14 + $0x80] sm:$0xff] }
  0x40   :  { %351 = vmatpush.bf16.msra.mxu0 %v3134_v9 }
  0x41   :  { %649 = vmatpush.bf16.msra.mxu1 %v3142_v24  ;;  %676 = vmatpush.bf16.msra.mxu3 %v3159_v34 }
  0x42   :  { %663 = vmatpush.bf16.msra.mxu2 %v3150_v25 }
  0x44   :  { %352 = vmatpush.bf16.msra.mxu0 %v3133_v10 }
  0x45   :  { %650 = vmatpush.bf16.msra.mxu1 %v3141_v28  ;;  %677 = vmatpush.bf16.msra.mxu3 %v3158_v38 }
  0x46   :  { %664 = vmatpush.bf16.msra.mxu2 %v3149_v29 }
  0x48   :  { %353 = vmatpush.bf16.msra.mxu0 %v3132_v11 }
  0x49   :  { %651 = vmatpush.bf16.msra.mxu1 %v3140_v32  ;;  %678 = vmatpush.bf16.msra.mxu3 %v3157_v42 }
  0x4a   :  { %665 = vmatpush.bf16.msra.mxu2 %v3148_v33 }
  0x4b   :  { %354 = vmatmul.bf16.vlgmr.msra.gmra.mxu0 %v3099_v12 }
  0x4c   :  { %882 = vmatpush.bf16.msrb.mxu0 %v3171_v18 }
  0x4d   :  { %896 = vmatpush.bf16.msrb.mxu1 %v3179_v36  ;;  %679 = vmatpush.bf16.msra.mxu3 %v3156_v47 }
  0x4e   :  { %910 = vmatpush.bf16.msrb.mxu2 %v3187_v37 }
  0x50   :  { %883 = vmatpush.bf16.msrb.mxu0 %v3170_v23 }
  0x51   :  { %897 = vmatpush.bf16.msrb.mxu1 %v3178_v40 }
  0x52   :  { %911 = vmatpush.bf16.msrb.mxu2 %v3186_v41 }
  0x54   :  { %884 = vmatpush.bf16.msrb.mxu0 %v3169_v27 }
  0x55   :  { %898 = vmatpush.bf16.msrb.mxu1 %v3177_v44 }
  0x56   :  { %912 = vmatpush.bf16.msrb.mxu2 %v3185_v45 }
  0x58   :  { %885 = vmatpush.bf16.msrb.mxu0 %v3168_v31 }
  0x59   :  { %899 = vmatpush.bf16.msrb.mxu1 %v3176_v50 }
  0x5a   :  { %913 = vmatpush.bf16.msrb.mxu2 %v3184_v51 }
  0x5c   :  { %886 = vmatpush.bf16.msrb.mxu0 %v3167_v35 }
  0x5d   :  { %900 = vmatpush.bf16.msrb.mxu1 %v3175_v54 }
  0x5e   :  { %914 = vmatpush.bf16.msrb.mxu2 %v3183_v55 }
  0x60   :  { %887 = vmatpush.bf16.msrb.mxu0 %v3166_v39 }
  0x61   :  { %901 = vmatpush.bf16.msrb.mxu1 %v3174_v58 }
  0x62   :  { %915 = vmatpush.bf16.msrb.mxu2 %v3182_v59 }
  0x64   :  { %888 = vmatpush.bf16.msrb.mxu0 %v3165_v43 }
  0x65   :  { %902 = vmatpush.bf16.msrb.mxu1 %v3173_v0  ;;  %v3193_v0 = vld [vmem:[#allocation15 + $0x28] sm:$0xff] }
  0x66   :  { %916 = vmatpush.bf16.msrb.mxu2 %v3181_v1 }
  0x68   :  { %889 = vmatpush.bf16.msrb.mxu0 %v3164_v48 }
  0x69   :  { %903 = vmatpush.bf16.msrb.mxu1 %v3172_v7 }
  0x6a   :  { %917 = vmatpush.bf16.msrb.mxu2 %v3180_v8 }
  0xc8   :  { %v355_v49 = vpop.f32.mrf.mxu0 }
  0xc9   :  { %v3784_v52 = vadd.f32 %v3313_v46, %v355_v49 }
  0xcb   :  { %v365_v53 = vpack.c.bf16 %v3784_v52, %v3784_v52 }
  0xcd   :  { %367 = vst [vmem:[#allocation2 + $0x4] sm:$0xf] %v365_v53 }
  0xd0   :  { %v357_v56 = vpop.f32.mrf.mxu0 }
  0xd1   :  { %v3788_v57 = vadd.f32 %v3313_v46, %v357_v56 }
  0xd3   :  { %v366_v60 = vpack.c.bf16 %v3788_v57, %v3788_v57 }
  0xd4   :  { %v3277_v61 = vld [vmem:[#allocation2] sm:$0xff]  }
  0xd5   :  { %368 = vst [vmem:[#allocation2 + $0xc] sm:$0xf] %v366_v60  ;;  %v3279_v62 = vunpack.c.h.b16 %v3277_v61  ;;  %v386_v63 = vshll.u32 %v3277_v61, 16  ;;  %v384_v2 = vshrl.u32 %v3277_v61, 16  ;;  %v3278_v11 = vunpack.c.l.b16 %v3277_v61  ;;  %v3195_v60 = vld [vmem:[#allocation15 + $0x38] sm:$0xff] }
  0xd6   :  { %1033 = vmatpush.bf16.msrb.mxu3 %v3195_v60 }
  0xd7   :  { %v388_v3 = vrot.slane %v386_v63, 1  ;;  %v397_v4 = vpack.c.b16 %v3279_v62, %v3279_v62 }
  0xd9   :  { %v389_v5 = vor.u32 %v388_v3, %v384_v2  ;;  %v399_v6 = vrot.slane %v397_v4, 5  ;;  %v3192_v3 = vld [vmem:[#allocation15 + $0x20] sm:$0xff] }
  0xda   :  { %v3315_v4 = vld [vmem:[%s4041_s8] ss:$0 sm:$0xff] }
  0xdb   :  { %v401_v9 = vunpack.c.l.b16 %v389_v5  ;;  %v403_v10 = vunpack.c.h.b16 %v389_v5  ;;  %v402_v13 = vunpack.c.l.b16 %v399_v6  ;;  %v404_v14 = vunpack.c.h.b16 %v399_v6  ;;  %v3191_v6 = vld [vmem:[#allocation15 + $0x18] sm:$0xff] }
  0xdc   :  { %v3297_v12 = vld [vmem:[#allocation2 + $0x8] sm:$0xff]  }
  0xdd   :  { %v3283_v15 = vunpack.c.h.b16 %v3297_v12  ;;  %v393_v16 = vshll.u32 %v3297_v12, 16  ;;  %v409_v17 = vpack.c.b16 %v401_v9, %v3278_v11  ;;  %v411_v18 = vpack.c.b16 %v403_v10, %v3279_v62  ;;  %v3194_v62 = vld [vmem:[#allocation15 + $0x30] sm:$0xff] }
  0xde   :  { %v391_v19 = vshrl.u32 %v3297_v12, 16  ;;  %v410_v22 = vpack.c.b16 %v402_v13, %v402_v13  ;;  %v412_v23 = vpack.c.b16 %v404_v14, %v404_v14  ;;  %v3282_v28 = vunpack.c.l.b16 %v3297_v12  ;;  %1034 = vmatpush.bf16.msrb.mxu3 %v3194_v62  ;;  %v3190_v9 = vld [vmem:[#allocation15 + $0x10] sm:$0xff]  ;;  %v3189_v13 = vld [vmem:[#allocation15 + $0x8] sm:$0xff] }
  0xdf   :  { %v395_v20 = vrot.slane %v393_v16, 1  ;;  %v398_v21 = vpack.c.b16 %v3283_v15, %v3283_v15  ;;  %v2413_v26 = vrot.slane %v409_v17, 11  ;;  %v422_v27 = vrot.slane %v411_v18, 7  ;;  %v3188_v17 = vld [vmem:[#allocation15] sm:$0xff] }
  0xe0   :  { %v2414_v34 = vrot.slane %v410_v22, 11  ;;  %v426_v35 = vrot.slane %v412_v23, 7  ;;  %v3811_v23 = vld [vmem:[#allocation6 + $0x38] sm:$0xff] }
  0xe1   :  { %v396_v24 = vor.u32 %v395_v20, %v391_v19  ;;  %v400_v25 = vrot.slane %v398_v21, 5  ;;  %v423_v38 = vsel %vm3792_vm2, %v2413_v26, %v422_v27  ;;  %1103 = vmatpush.bf16.xpose.msra.mxu0 %v3811_v23  ;;  %v3817_v26 = vld [vmem:[#allocation6 + $0x30] sm:$0xff] }
  0xe2   :  { %v427_v43 = vsel %vm3792_vm2, %v2414_v34, %v426_v35  ;;  %v488_v47 = vunpack.c.l.b16 %v423_v38  ;;  %v489_v49 = vunpack.c.h.b16 %v423_v38  ;;  %1035 = vmatpush.bf16.msrb.mxu3 %v3193_v0  ;;  %v3819_v27 = vld [vmem:[#allocation6 + $0x70] sm:$0xff]  ;;  %v3823_v35 = vld [vmem:[#allocation6 + $0x28] sm:$0xff] }
  0xe3   :  { %v405_v29 = vunpack.c.l.b16 %v396_v24  ;;  %v407_v30 = vunpack.c.h.b16 %v396_v24  ;;  %v406_v32 = vunpack.c.l.b16 %v400_v25  ;;  %v408_v33 = vunpack.c.h.b16 %v400_v25  ;;  %v3813_v24 = vld [vmem:[#allocation6 + $0x78] sm:$0xff] }
  0xe4   :  { %v490_v53 = vunpack.c.l.b16 %v427_v43 }
  0xe5   :  { %v413_v36 = vpack.c.b16 %v405_v29, %v3282_v28  ;;  %v415_v37 = vpack.c.b16 %v407_v30, %v3283_v15  ;;  %v414_v39 = vpack.c.b16 %v406_v32, %v406_v32  ;;  %v416_v40 = vpack.c.b16 %v408_v33, %v408_v33 }
  0xe6   :  { %1036 = vmatpush.bf16.msrb.mxu3 %v3192_v3 }
  0xe7   :  { %v2415_v41 = vrot.slane %v413_v36, 11  ;;  %v430_v42 = vrot.slane %v415_v37, 7  ;;  %v2416_v44 = vrot.slane %v414_v39, 11  ;;  %v434_v45 = vrot.slane %v416_v40, 7  ;;  %v3825_v36 = vld [vmem:[#allocation6 + $0x68] sm:$0xff] }
  0xe8   :  { %v3314_v37 = vld [vmem:[%s4039_s6] ss:$0 sm:$0xff] }
  0xe9   :  { %v431_v46 = vsel %vm3792_vm2, %v2415_v41, %v430_v42  ;;  %v435_v51 = vsel %vm3792_vm2, %v2416_v44, %v434_v45  ;;  %1104 = vmatpush.bf16.xpose.msra.mxu0 %v3817_v26 }
  0xea   :  { %v491_v48 = vunpack.c.l.b16 %v431_v46  ;;  %v492_v50 = vunpack.c.h.b16 %v431_v46  ;;  %v493_v54 = vunpack.c.l.b16 %v435_v51  ;;  %1037 = vmatpush.bf16.msrb.mxu3 %v3191_v6  ;;  %v3848_v6 = vld [vmem:[#allocation6 + $0x58] sm:$0xff] }
  0xec   :  { %v494_v55 = vpack.c.b16 %v491_v48, %v488_v47  ;;  %v495_v56 = vpack.c.b16 %v492_v50, %v489_v49  ;;  %v496_v58 = vpack.c.b16 %v493_v54, %v490_v53  ;;  %v3834_v54 = vld [vmem:[#allocation6 + $0x20] sm:$0xff] }
  0xee   :  { %652 = vmatmul.bf16.vlgmr.msra.gmra.mxu1 %v494_v55  ;;  %666 = vmatmul.bf16.vlgmr.msra.gmra.mxu2 %v495_v56 }
  0xef   :  { %680 = vmatmul.bf16.vlgmr.msra.gmra.mxu3 %v496_v58  ;;  %890 = vmatmul.bf16.vlgmr.msrb.gmra.mxu0 %v494_v55  ;;  %v3836_v55 = vld [vmem:[#allocation6 + $0x60] sm:$0xff] }
  0xf0   :  { %1038 = vmatpush.bf16.msrb.mxu3 %v3190_v9  ;;  %1164 = vmatpush.bf16.xpose.msra.mxu1 %v3813_v24  ;;  %v3858_v9 = vld [vmem:[#allocation6 + $0x8] sm:$0xff] }
  0xf1   :  { %1105 = vmatpush.bf16.xpose.msra.mxu0 %v3823_v35 }
  0xf4   :  { %1039 = vmatpush.bf16.msrb.mxu3 %v3189_v13  ;;  %v3870_v13 = vld [vmem:[#allocation3] sm:$0xff]  }
  0xf8   :  { %1040 = vmatpush.bf16.msrb.mxu3 %v3188_v17  ;;  %1165 = vmatpush.bf16.xpose.msra.mxu1 %v3819_v27 }
  0xf9   :  { %1106 = vmatpush.bf16.xpose.msra.mxu0 %v3834_v54 }
  0xfe   :  { %904 = vmatmul.bf16.vlgmr.msrb.gmra.mxu1 %v495_v56  ;;  %918 = vmatmul.bf16.vlgmr.msrb.gmra.mxu2 %v496_v58 }
 0x100   :  { %1166 = vmatpush.bf16.xpose.msra.mxu1 %v3825_v36 }
 0x108   :  { %1167 = vmatpush.bf16.xpose.msra.mxu1 %v3836_v55 }
 0x110   :  { %1168 = vmatpush.bf16.xpose.msra.mxu1 %v3848_v6 }
 0x16b   :  { %v3804_v59 = vpop.f32.mrf.mxu1 }
 0x16c   :  { %v891_v1 = vpop.f32.mrf.mxu0  ;;  %v654_v42 = vadd.f32 %v3314_v37, %v3804_v59 }
 0x16d   :  { %v892_v7 = vadd.f32 %v3315_v4, %v891_v1 }
 0x171   :  { %v3806_v61 = vpop.f32.mrf.mxu2 }
 0x172   :  { %v681_v38 = vpop.f32.mrf.mxu3  ;;  %v668_v47 = vadd.f32 %v3806_v61, %v654_v42  ;;  %v3888_v42 = vld [vmem:[#allocation8 + $0x38] sm:$0xff] }
 0x173   :  { %v655_v63 = vpop.f32.mrf.mxu1  ;;  %1247 = vmatpush.bf16.msra.mxu2 %v3888_v42 }
 0x174   :  { %v893_v12 = vpop.f32.mrf.mxu0  ;;  %v656_v43 = vadd.f32 %v3314_v37, %v655_v63  ;;  %v682_v61 = vadd.f32 %v681_v38, %v668_v47  ;;  %v3902_v47 = vld [vmem:[#allocation8 + $0x68] sm:$0xff] }
 0x175   :  { %v894_v16 = vadd.f32 %v3315_v4, %v893_v12  ;;  %v3867_v12 = vld [vmem:[#allocation6 + $0x40] sm:$0xff] }
 0x179   :  { %v669_v2 = vpop.f32.mrf.mxu2 }
 0x17a   :  { %v670_v48 = vadd.f32 %v669_v2, %v656_v43  ;;  %v683_v59 = vpop.f32.mrf.mxu3  ;;  %v3890_v43 = vld [vmem:[#allocation8 + $0x78] sm:$0xff] }
 0x17b   :  { %v905_v5 = vpop.f32.mrf.mxu1  ;;  %1308 = vmatpush.bf16.msra.mxu3 %v3890_v43 }
 0x17c   :  { %v906_v8 = vadd.f32 %v905_v5, %v892_v7  ;;  %v684_v63 = vadd.f32 %v683_v59, %v670_v48  ;;  %v3846_v5 = vld [vmem:[#allocation6 + $0x18] sm:$0xff]  ;;  %v3852_v7 = vld [vmem:[#allocation6 + $0x10] sm:$0xff]  ;;  %v3905_v48 = vld [vmem:[#allocation8 + $0x20] sm:$0xff] }
 0x17d   :  { %1107 = vmatpush.bf16.xpose.msra.mxu0 %v3846_v5 }
 0x181   :  { %v919_v10 = vpop.f32.mrf.mxu2 }
 0x182   :  { %v920_v11 = vadd.f32 %v919_v10, %v906_v8  ;;  %v3854_v8 = vld [vmem:[#allocation6 + $0x50] sm:$0xff]  ;;  %v3861_v10 = vld [vmem:[#allocation6] sm:$0xff] }
 0x183   :  { %v907_v15 = vpop.f32.mrf.mxu1  ;;  %1169 = vmatpush.bf16.xpose.msra.mxu1 %v3854_v8 }
 0x184   :  { %v2609_v14 = vmul.f32 -1.442695, %v920_v11  ;;  %v908_v18 = vadd.f32 %v907_v15, %v894_v16  ;;  %v3863_v11 = vld [vmem:[#allocation6 + $0x48] sm:$0xff]  ;;  %v1047_v15 = vunpack.c.l.bf16 %v3870_v13 }
 0x185   :  { %1108 = vmatpush.bf16.xpose.msra.mxu0 %v3852_v7 }
 0x186   :  { %3323 = vpow2.f32 %v2609_v14  ;;  %v3316_v14 = vld [vmem:[%s4043_s10] ss:$0 sm:$0xff] }
 0x189   :  { %v921_v19 = vpop.f32.mrf.mxu2 }
 0x18a   :  { %v922_v20 = vadd.f32 %v921_v19, %v908_v18 }
 0x18b   :  { %1170 = vmatpush.bf16.xpose.msra.mxu1 %v3863_v11 }
 0x18c   :  { %v3324_v21 = vpop.eup %3323  ;;  %v2610_v22 = vmul.f32 -1.442695, %v922_v20 }
 0x18d   :  { %v930_v25 = vadd.f32 1.0, %v3324_v21  ;;  %1109 = vmatpush.bf16.xpose.msra.mxu0 %v3858_v9  ;;  %v1048_v21 = vunpack.c.h.bf16 %v3870_v13 }
 0x18e   :  { %3325 = vpow2.f32 %v2610_v22 }
 0x18f   :  { %3327 = vrcp.f32 %v930_v25  ;;  %v943_v44 = vand.u32 2147483648, %v930_v25  ;;  %vm937_vm4 = vweird.f32 %v930_v25  ;;  %v941_v46 = vand.u32 2147483647, %v930_v25 }
 0x191   :  { %v944_v56 = vor.u32 1.1754944e-38, %v943_v44  ;;  %vm942_vm7 = vcmp.eq.f32.partialorder %v941_v46, 8.507059e+37  ;;  %v3893_v44 = vld [vmem:[#allocation8 + $0x30] sm:$0xff]  ;;  %v3899_v46 = vld [vmem:[#allocation8 + $0x28] sm:$0xff] }
 0x192   :  { %1248 = vmatpush.bf16.msra.mxu2 %v3893_v44 }
 0x193   :  { %1171 = vmatpush.bf16.xpose.msra.mxu1 %v3867_v12 }
 0x194   :  { %v3326_v28 = vpop.eup %3325 }
 0x195   :  { %v3328_v29 = vpop.eup %3327  ;;  %v931_v30 = vadd.f32 1.0, %v3326_v28  ;;  %1110 = vmatpush.bf16.xpose.msra.mxu0 %v3861_v10 }
 0x196   :  { %v933_v32 = vmul.f32 %v3328_v29, %v930_v25  ;;  %vm938_vm3 = vweird.f32 %v3328_v29  ;;  %1249 = vmatpush.bf16.msra.mxu2 %v3899_v46 }
 0x197   :  { %3329 = vrcp.f32 %v931_v30  ;;  %vm939_vm5 = vmor %vm937_vm4, %vm938_vm3  ;;  %v958_v49 = vand.u32 2147483648, %v931_v30  ;;  %v956_v53 = vand.u32 2147483647, %v931_v30  ;;  %vm952_vm8 = vweird.f32 %v931_v30 }
 0x198   :  { %v934_v33 = vsub.f32 1.0, %v933_v32  ;;  %v362_v32 = vlaneseq }
 0x199   :  { %v959_v62 = vor.u32 1.1754944e-38, %v958_v49  ;;  %vm957_vm10 = vcmp.eq.f32.partialorder %v956_v53, 8.507059e+37 }
 0x19a   :  { %v935_v34 = vmul.f32 %v3328_v29, %v934_v33  ;;  %v3881_v33 = vand.u32 127, %v362_v32  ;;  %1250 = vmatpush.bf16.msra.mxu2 %v3905_v48 }
 0x19c   :  { %v936_v41 = vadd.f32 %v3328_v29, %v935_v34  ;;  %vm364_vm11 = vcmp.lt.s32.totalorder %v3881_v33, 10  ;;  %v3265_v33 = vld [vmem:[#allocation17 + $0x28] sm:$0xff] }
 0x19d   :  { %v3330_v39 = vpop.eup %3329 }
 0x19e   :  { %v948_v40 = vmul.f32 %v3330_v39, %v931_v30  ;;  %v940_v50 = vsel %vm939_vm5, %v3328_v29, %v936_v41  ;;  %vm953_vm6 = vweird.f32 %v3330_v39 }
 0x19f   :  { %v945_v60 = vsel %vm942_vm7, %v944_v56, %v940_v50  ;;  %vm954_vm9 = vmor %vm952_vm8, %vm953_vm6 }
 0x1a0   :  { %v949_v45 = vsub.f32 1.0, %v948_v40  ;;  %v3840_v2 = vmul.f32 %v945_v60, %v682_v61  ;;  %v3912_v61 = vld [vmem:[#allocation8 + $0x10] sm:$0xff] }
 0x1a2   :  { %v950_v51 = vmul.f32 %v3330_v39, %v949_v45  ;;  %v3896_v45 = vld [vmem:[#allocation8 + $0x70] sm:$0xff] }
 0x1a3   :  { %1309 = vmatpush.bf16.msra.mxu3 %v3896_v45 }
 0x1a4   :  { %v951_v58 = vadd.f32 %v3330_v39, %v950_v51  ;;  %v3909_v51 = vld [vmem:[#allocation8 + $0x18] sm:$0xff] }
 0x1a5   :  { %1251 = vmatpush.bf16.msra.mxu2 %v3909_v51 }
 0x1a6   :  { %v955_v0 = vsel %vm954_vm9, %v3330_v39, %v951_v58 }
 0x1a7   :  { %v960_v1 = vsel %vm957_vm10, %v959_v62, %v955_v0  ;;  %1310 = vmatpush.bf16.msra.mxu3 %v3902_v47  ;;  %v3918_v0 = vld [vmem:[#allocation8 + $0x8] sm:$0xff] }
 0x1a8   :  { %v3842_v3 = vmul.f32 %v960_v1, %v684_v63  ;;  %v3914_v63 = vld [vmem:[#allocation8 + $0x60] sm:$0xff]  ;;  %v3920_v1 = vld [vmem:[#allocation8 + $0x58] sm:$0xff] }
 0x1a9   :  { %1252 = vmatpush.bf16.msra.mxu2 %v3912_v61 }
 0x1aa   :  { %v964_v4 = vpack.c.bf16 %v3842_v3, %v3840_v2 }
 0x1ab   :  { %1311 = vmatpush.bf16.msra.mxu3 %v3914_v63 }
 0x1ac   :  { %1041 = vmatmul.bf16.vlgmr.msrb.gmra.mxu3 %v964_v4  ;;  %v3924_v4 = vld [vmem:[#allocation8] sm:$0xff] }
 0x1ad   :  { %1253 = vmatpush.bf16.msra.mxu2 %v3918_v0 }
 0x1af   :  { %1312 = vmatpush.bf16.msra.mxu3 %v3920_v1 }
 0x1b1   :  { %1254 = vmatpush.bf16.msra.mxu2 %v3924_v4 }
 0x22f   :  { %v1042_v16 = vpop.f32.mrf.mxu3 }
 0x230   :  { %v1043_v17 = vadd.f32 %v3316_v14, %v1042_v16  ;;  %v3930_v16 = vld [vmem:[#allocation8 + $0x48] sm:$0xff] }
 0x232   :  { %v1049_v18 = vadd.f32 %v1047_v15, %v1043_v17  ;;  %v3933_v17 = vld [vmem:[#allocation8 + $0x40] sm:$0xff] }
 0x234   :  { %v1051_v19 = vmul.f32 0.70710677, %v1049_v18  ;;  %v3203_v18 = vld [vmem:[#allocation17 + $0x38] sm:$0xff] }
 0x235   :  { %1390 = vmatpush.bf16.msrb.mxu2 %v3203_v18  ;;  %v3219_v18 = vld [vmem:[#allocation12 + $0x138] sm:$0xff] }
 0x236   :  { %v1053_v20 = vpack.c.bf16 %v1051_v19, %v1051_v19  ;;  %v3202_v19 = vld [vmem:[#allocation17 + $0x30] sm:$0xff]  ;;  %1704 = vmatpush.bf16.msrb.mxu0 %v3219_v18  ;;  %v3317_v18 = vld [vmem:[%s4045_s12] ss:$0 sm:$0xff] }
 0x237   :  { %v1044_v22 = vpop.f32.mrf.mxu3 }
 0x238   :  { %v1045_v25 = vadd.f32 %v3316_v14, %v1044_v22  ;;  %1111 = vmatmul.bf16.vlgmr.msra.gmra.mxu0 %v1053_v20  ;;  %v3926_v14 = vld [vmem:[#allocation8 + $0x50] sm:$0xff]  ;;  %v3200_v22 = vld [vmem:[#allocation17 + $0x20] sm:$0xff] }
 0x239   :  { %1313 = vmatpush.bf16.msra.mxu3 %v3926_v14  ;;  %1391 = vmatpush.bf16.msrb.mxu2 %v3202_v19  ;;  %v3201_v20 = vld [vmem:[#allocation17 + $0x28] sm:$0xff]  ;;  %v3210_v19 = vld [vmem:[#allocation12 + $0xf0] sm:$0xff] }
 0x23a   :  { %v1050_v28 = vadd.f32 %v1048_v21, %v1045_v25 }
 0x23c   :  { %v1052_v29 = vmul.f32 0.70710677, %v1050_v28  ;;  %v3199_v28 = vld [vmem:[#allocation17 + $0x18] sm:$0xff] }
 0x23d   :  { %1314 = vmatpush.bf16.msra.mxu3 %v3930_v16  ;;  %1392 = vmatpush.bf16.msrb.mxu2 %v3201_v20  ;;  %v3209_v20 = vld [vmem:[#allocation12 + $0xe8] sm:$0xff] }
 0x23e   :  { %v1054_v30 = vpack.c.bf16 %v1052_v29, %v1052_v29 }
 0x240   :  { %1172 = vmatmul.bf16.vlgmr.msra.gmra.mxu1 %v1054_v30 }
 0x241   :  { %1315 = vmatpush.bf16.msra.mxu3 %v3933_v17  ;;  %1393 = vmatpush.bf16.msrb.mxu2 %v3200_v22  ;;  %v3217_v22 = vld [vmem:[#allocation12 + $0x128] sm:$0xff] }
 0x245   :  { %1394 = vmatpush.bf16.msrb.mxu2 %v3199_v28  ;;  %v3216_v28 = vld [vmem:[#allocation12 + $0x120] sm:$0xff] }
 0x2b5   :  { %v1112_v34 = vpop.f32.mrf.mxu0 }
 0x2b6   :  { %v1177_v37 = vsel %vm364_vm11, %v1112_v34, -1e+30 }
 0x2b7   :  { %1179 = vmax.xlane.f32.xlu0 %v1177_v37 }
 0x2bd   :  { %v1114_v38 = vpop.f32.mrf.mxu0  ;;  %v1173_v39 = vpop.f32.mrf.mxu1 }
 0x2be   :  { %v1178_v40 = vsel %vm364_vm11, %v1173_v39, -1e+30 }
 0x2bf   :  { %1181 = vmax.xlane.f32.xlu0 %v1178_v40 }
 0x2c5   :  { %v1175_v41 = vpop.f32.mrf.mxu1 }
 0x2c6   :  { %v3197_v41 = vld [vmem:[#allocation17 + $0x8] sm:$0xff] }
 0x32a   :  { %v1180_v49 = vpop.xlane.xlu0 %1179 }
 0x32b   :  { %v1183_v50 = vsub.f32 %v1177_v37, %v1180_v49  ;;  %v3196_v49 = vld [vmem:[#allocation17] sm:$0xff] }
 0x32d   :  { %v1185_v53 = vmul.f32 1.442695, %v1183_v50 }
 0x32f   :  { %3331 = vpow2.f32 %v1185_v53 }
 0x332   :  { %v1182_v56 = vpop.xlane.xlu0 %1181 }
 0x333   :  { %v1184_v58 = vsub.f32 %v1178_v40, %v1182_v56  ;;  %v3198_v40 = vld [vmem:[#allocation17 + $0x10] sm:$0xff] }
 0x334   :  { %1395 = vmatpush.bf16.msrb.mxu2 %v3198_v40  ;;  %v3214_v40 = vld [vmem:[#allocation12 + $0x110] sm:$0xff] }
 0x335   :  { %v3332_v59 = vpop.eup %3331  ;;  %v1187_v60 = vmul.f32 1.442695, %v1184_v58 }
 0x336   :  { %1189 = vadd.xlane.f32.xlu1 %v3332_v59 }
 0x337   :  { %3333 = vpow2.f32 %v1187_v60  ;;  %v3211_v60 = vld [vmem:[#allocation12 + $0xf8] sm:$0xff] }
 0x338   :  { %1396 = vmatpush.bf16.msrb.mxu2 %v3197_v41  ;;  %1690 = vmatpush.bf16.msrb.mxu3 %v3211_v60  ;;  %v3225_v41 = vld [vmem:[#allocation12 + $0x168] sm:$0xff]  ;;  %v3212_v60 = vld [vmem:[#allocation12 + $0x100] sm:$0xff] }
 0x33c   :  { %1397 = vmatpush.bf16.msrb.mxu2 %v3196_v49  ;;  %1691 = vmatpush.bf16.msrb.mxu3 %v3210_v19  ;;  %v3233_v49 = vld [vmem:[#allocation14 + $0xe8] sm:$0xff]  ;;  %v3223_v19 = vld [vmem:[#allocation12 + $0x158] sm:$0xff] }
 0x33d   :  { %v3334_v62 = vpop.eup %3333 }
 0x33e   :  { %1191 = vadd.xlane.f32.xlu1 %v3334_v62 }
 0x340   :  { %1692 = vmatpush.bf16.msrb.mxu3 %v3209_v20  ;;  %v3243_v20 = vld [vmem:[#allocation14 + $0x138] sm:$0xff] }
 0x3a9   :  { %v1190_v25 = vpop.xlane.xlu1 %1189 }
 0x3aa   :  { %3335 = vrcp.f32 %v1190_v25  ;;  %v3208_v25 = vld [vmem:[#allocation12 + $0xe0] sm:$0xff] }
 0x3ab   :  { %1693 = vmatpush.bf16.msrb.mxu3 %v3208_v25 }
 0x3b0   :  { %v3336_v29 = vpop.eup %3335 }
 0x3b1   :  { %v1195_v30 = vmul.f32 %v3336_v29, %v3332_v59  ;;  %v1192_v32 = vpop.xlane.xlu1 %1191  ;;  %v3227_v29 = vld [vmem:[#allocation12 + $0x178] sm:$0xff] }
 0x3b2   :  { %3337 = vrcp.f32 %v1192_v32  ;;  %1718 = vmatpush.bf16.msrb.mxu1 %v3227_v29  ;;  %v3207_v32 = vld [vmem:[#allocation12 + $0xd8] sm:$0xff]  ;;  %v3222_v29 = vld [vmem:[#allocation12 + $0x150] sm:$0xff] }
 0x3b3   :  { %v1197_v34 = vpack.c.bf16 %v1195_v30, %v1195_v30  ;;  %v3235_v30 = vld [vmem:[#allocation14 + $0xf8] sm:$0xff]  ;;  %1694 = vmatpush.bf16.msrb.mxu3 %v3207_v32  ;;  %v3242_v32 = vld [vmem:[#allocation14 + $0x130] sm:$0xff] }
 0x3b5   :  { %1255 = vmatmul.bf16.vlgmr.msra.gmra.mxu2 %v1197_v34  ;;  %v3215_v34 = vld [vmem:[#allocation12 + $0x118] sm:$0xff] }
 0x3b6   :  { %1930 = vmatpush.bf16.msra.mxu2 %v3235_v30  ;;  %v3230_v30 = vld [vmem:[#allocation14 + $0xd0] sm:$0xff] }
 0x3b8   :  { %v3338_v37 = vpop.eup %3337 }
 0x3b9   :  { %v1196_v38 = vmul.f32 %v3338_v37, %v3334_v62  ;;  %v3218_v62 = vld [vmem:[#allocation12 + $0x130] sm:$0xff] }
 0x3ba   :  { %1705 = vmatpush.bf16.msrb.mxu0 %v3218_v62  ;;  %v3226_v37 = vld [vmem:[#allocation12 + $0x170] sm:$0xff]  ;;  %v3231_v62 = vld [vmem:[#allocation14 + $0xd8] sm:$0xff] }
 0x3bb   :  { %v1198_v39 = vpack.c.bf16 %v1196_v38, %v1196_v38  ;;  %v3234_v38 = vld [vmem:[#allocation14 + $0xf0] sm:$0xff]  ;;  %1719 = vmatpush.bf16.msrb.mxu1 %v3226_v37 }
 0x3bc   :  { %1931 = vmatpush.bf16.msra.mxu2 %v3234_v38 }
 0x3bd   :  { %1316 = vmatmul.bf16.vlgmr.msra.gmra.mxu3 %v1198_v39  ;;  %v3206_v39 = vld [vmem:[#allocation12 + $0xd0] sm:$0xff] }
 0x3be   :  { %1706 = vmatpush.bf16.msrb.mxu0 %v3217_v22  ;;  %1695 = vmatpush.bf16.msrb.mxu3 %v3206_v39  ;;  %v3251_v22 = vld [vmem:[#allocation14 + $0x178] sm:$0xff]  ;;  %v3221_v39 = vld [vmem:[#allocation12 + $0x148] sm:$0xff] }
 0x3bf   :  { %1720 = vmatpush.bf16.msrb.mxu1 %v3225_v41  ;;  %v3241_v41 = vld [vmem:[#allocation14 + $0x128] sm:$0xff] }
 0x3c0   :  { %1932 = vmatpush.bf16.msra.mxu2 %v3233_v49  ;;  %v3249_v49 = vld [vmem:[#allocation14 + $0x168] sm:$0xff] }
 0x3c2   :  { %1707 = vmatpush.bf16.msrb.mxu0 %v3216_v28 }
 0x3c6   :  { %1708 = vmatpush.bf16.msrb.mxu0 %v3215_v34  ;;  %v3250_v34 = vld [vmem:[#allocation14 + $0x170] sm:$0xff] }
 0x3ca   :  { %1709 = vmatpush.bf16.msrb.mxu0 %v3214_v40  ;;  %v3229_v40 = vld [vmem:[#allocation14 + $0xc8] sm:$0xff] }
 0x438   :  { %v1256_v50 = vpop.f32.mrf.mxu2 }
 0x440   :  { %v1258_v53 = vpop.f32.mrf.mxu2  ;;  %v1317_v56 = vpop.f32.mrf.mxu3 }
 0x441   :  { %v1321_v58 = vpack.c.bf16 %v1317_v56, %v1256_v50  ;;  %v3205_v50 = vld [vmem:[#allocation12 + $0xc8] sm:$0xff]  ;;  %v3224_v56 = vld [vmem:[#allocation12 + $0x160] sm:$0xff] }
 0x442   :  { %v3213_v53 = vld [vmem:[#allocation12 + $0x108] sm:$0xff]  ;;  %1696 = vmatpush.bf16.msrb.mxu3 %v3205_v50  ;;  %1721 = vmatpush.bf16.msrb.mxu1 %v3224_v56 }
 0x443   :  { %1398 = vmatmul.bf16.vlgmr.msrb.gmra.mxu2 %v1321_v58  ;;  %v3232_v58 = vld [vmem:[#allocation14 + $0xe0] sm:$0xff]  ;;  %1710 = vmatpush.bf16.msrb.mxu0 %v3213_v53 }
 0x444   :  { %1933 = vmatpush.bf16.msra.mxu2 %v3232_v58 }
 0x446   :  { %1722 = vmatpush.bf16.msrb.mxu1 %v3223_v19  ;;  %v3248_v19 = vld [vmem:[#allocation14 + $0x160] sm:$0xff] }
 0x447   :  { %1711 = vmatpush.bf16.msrb.mxu0 %v3212_v60  ;;  %v3228_v60 = vld [vmem:[#allocation14 + $0xc0] sm:$0xff] }
 0x448   :  { %v1319_v59 = vpop.f32.mrf.mxu3  ;;  %1934 = vmatpush.bf16.msra.mxu2 %v3231_v62 }
 0x449   :  { %v3204_v59 = vld [vmem:[#allocation12 + $0xc0] sm:$0xff] }
 0x44a   :  { %1697 = vmatpush.bf16.msrb.mxu3 %v3204_v59  ;;  %1723 = vmatpush.bf16.msrb.mxu1 %v3222_v29  ;;  %v3220_v59 = vld [vmem:[#allocation12 + $0x140] sm:$0xff]  ;;  %v3238_v29 = vld [vmem:[#allocation14 + $0x110] sm:$0xff] }
 0x44b   :  { %1958 = vmatpush.bf16.msra.mxu0 %v3251_v22 }
 0x44c   :  { %1935 = vmatpush.bf16.msra.mxu2 %v3230_v30  ;;  %v3246_v30 = vld [vmem:[#allocation14 + $0x150] sm:$0xff] }
 0x44e   :  { %1944 = vmatpush.bf16.msra.mxu3 %v3243_v20  ;;  %1724 = vmatpush.bf16.msrb.mxu1 %v3221_v39 }
 0x44f   :  { %1959 = vmatpush.bf16.msra.mxu0 %v3250_v34 }
 0x450   :  { %1936 = vmatpush.bf16.msra.mxu2 %v3229_v40 }
 0x452   :  { %1945 = vmatpush.bf16.msra.mxu3 %v3242_v32  ;;  %1725 = vmatpush.bf16.msrb.mxu1 %v3220_v59  ;;  %v3244_v59 = vld [vmem:[#allocation14 + $0x140] sm:$0xff] }
 0x453   :  { %1960 = vmatpush.bf16.msra.mxu0 %v3249_v49 }
 0x454   :  { %1937 = vmatpush.bf16.msra.mxu2 %v3228_v60 }
 0x456   :  { %1946 = vmatpush.bf16.msra.mxu3 %v3241_v41 }
 0x457   :  { %1961 = vmatpush.bf16.msra.mxu0 %v3248_v19 }
 0x458   :  { %2101 = vmatpush.bf16.xpose.msrb.mxu2 %v3811_v23 }
 0x460   :  { %2102 = vmatpush.bf16.xpose.msrb.mxu2 %v3817_v26 }
 0x468   :  { %2103 = vmatpush.bf16.xpose.msrb.mxu2 %v3823_v35 }
 0x470   :  { %2104 = vmatpush.bf16.xpose.msrb.mxu2 %v3834_v54 }
 0x478   :  { %2105 = vmatpush.bf16.xpose.msrb.mxu2 %v3846_v5  ;;  %v3257_v5 = vld [vmem:[#allocation15 + $0x28] sm:$0xff] }
 0x480   :  { %2106 = vmatpush.bf16.xpose.msrb.mxu2 %v3852_v7 }
 0x488   :  { %2107 = vmatpush.bf16.xpose.msrb.mxu2 %v3858_v9 }
 0x490   :  { %2108 = vmatpush.bf16.xpose.msrb.mxu2 %v3861_v10  ;;  %v3256_v10 = vld [vmem:[#allocation15 + $0x20] sm:$0xff] }
 0x4c6   :  { %v1399_v25 = vpop.f32.mrf.mxu2 }
 0x4c7   :  { %v1400_v28 = vadd.f32 %v3317_v18, %v1399_v25  ;;  %v3247_v25 = vld [vmem:[#allocation14 + $0x158] sm:$0xff] }
 0x4c8   :  { %1962 = vmatpush.bf16.msra.mxu0 %v3247_v25 }
 0x4c9   :  { %v1404_v37 = vmul.f32 0.70710677, %v1400_v28 }
 0x4cb   :  { %v1406_v38 = vadd.f32 %v1404_v37, %v3840_v2  ;;  %v3240_v2 = vld [vmem:[#allocation14 + $0x120] sm:$0xff] }
 0x4cc   :  { %1947 = vmatpush.bf16.msra.mxu3 %v3240_v2  ;;  %1963 = vmatpush.bf16.msra.mxu0 %v3246_v30 }
 0x4cd   :  { %v1408_v50 = vadd.f32 %v1406_v38, %v3784_v52  ;;  %v3245_v38 = vld [vmem:[#allocation14 + $0x148] sm:$0xff] }
 0x4ce   :  { %v1401_v53 = vpop.f32.mrf.mxu2 }
 0x4cf   :  { %v3941_v56 = vmul.f32 0.70710677, %v1408_v50  ;;  %v1402_v58 = vadd.f32 %v3317_v18, %v1401_v53  ;;  %v3239_v18 = vld [vmem:[#allocation14 + $0x118] sm:$0xff]  ;;  %v3236_v50 = vld [vmem:[#allocation14 + $0x100] sm:$0xff] }
 0x4d0   :  { %1948 = vmatpush.bf16.msra.mxu3 %v3239_v18  ;;  %1964 = vmatpush.bf16.msra.mxu0 %v3245_v38 }
 0x4d1   :  { %v1412_v62 = vpack.c.bf16 %v3941_v56, %v3941_v56  ;;  %v1405_v20 = vmul.f32 0.70710677, %v1402_v58 }
 0x4d3   :  { %1414 = vst [vmem:[#allocation2 + $0x4] sm:$0xf] %v1412_v62  ;;  %v1407_v22 = vadd.f32 %v1405_v20, %v3842_v3 }
 0x4d4   :  { %1949 = vmatpush.bf16.msra.mxu3 %v3238_v29  ;;  %1965 = vmatpush.bf16.msra.mxu0 %v3244_v59 }
 0x4d5   :  { %v1409_v52 = vadd.f32 %v1407_v22, %v3788_v57  ;;  %v3237_v57 = vld [vmem:[#allocation14 + $0x108] sm:$0xff] }
 0x4d7   :  { %v3948_v28 = vmul.f32 0.70710677, %v1409_v52 }
 0x4d8   :  { %1950 = vmatpush.bf16.msra.mxu3 %v3237_v57 }
 0x4d9   :  { %v1413_v32 = vpack.c.bf16 %v3948_v28, %v3948_v28 }
 0x4da   :  { %v3285_v3 = vld [vmem:[#allocation2] sm:$0xff]  }
 0x4db   :  { %1415 = vst [vmem:[#allocation2 + $0xc] sm:$0xf] %v1413_v32  ;;  %v3287_v34 = vunpack.c.h.b16 %v3285_v3  ;;  %v1433_v37 = vshll.u32 %v3285_v3, 16  ;;  %v1431_v39 = vshrl.u32 %v3285_v3, 16  ;;  %v3286_v60 = vunpack.c.l.b16 %v3285_v3 }
 0x4dc   :  { %1951 = vmatpush.bf16.msra.mxu3 %v3236_v50 }
 0x4dd   :  { %v1435_v40 = vrot.slane %v1433_v37, 1  ;;  %v1444_v23 = vpack.c.b16 %v3287_v34, %v3287_v34 }
 0x4df   :  { %v1436_v41 = vor.u32 %v1435_v40, %v1431_v39  ;;  %v1446_v49 = vrot.slane %v1444_v23, 5 }
 0x4e1   :  { %v1448_v53 = vunpack.c.l.b16 %v1436_v41  ;;  %v1450_v58 = vunpack.c.h.b16 %v1436_v41  ;;  %v1449_v19 = vunpack.c.l.b16 %v1446_v49  ;;  %v1451_v62 = vunpack.c.h.b16 %v1446_v49 }
 0x4e2   :  { %v3298_v2 = vld [vmem:[#allocation2 + $0x8] sm:$0xff]  }
 0x4e3   :  { %v3291_v20 = vunpack.c.h.b16 %v3298_v2  ;;  %v1440_v22 = vshll.u32 %v3298_v2, 16  ;;  %v1456_v52 = vpack.c.b16 %v1448_v53, %v3286_v60  ;;  %v1458_v18 = vpack.c.b16 %v1450_v58, %v3287_v34 }
 0x4e4   :  { %v1438_v25 = vshrl.u32 %v3298_v2, 16  ;;  %v1457_v30 = vpack.c.b16 %v1449_v19, %v1449_v19  ;;  %v1459_v32 = vpack.c.b16 %v1451_v62, %v1451_v62  ;;  %v3290_v39 = vunpack.c.l.b16 %v3298_v2 }
 0x4e5   :  { %v1442_v29 = vrot.slane %v1440_v22, 1  ;;  %v1445_v26 = vpack.c.b16 %v3291_v20, %v3291_v20  ;;  %v2803_v38 = vrot.slane %v1456_v52, 11  ;;  %v1466_v3 = vrot.slane %v1458_v18, 7 }
 0x4e6   :  { %v2804_v53 = vrot.slane %v1457_v30, 11  ;;  %v1470_v34 = vrot.slane %v1459_v32, 7 }
 0x4e7   :  { %v1443_v37 = vor.u32 %v1442_v29, %v1438_v25  ;;  %v1447_v57 = vrot.slane %v1445_v26, 5  ;;  %v1467_v59 = vsel %vm3792_vm2, %v2803_v38, %v1466_v3 }
 0x4e8   :  { %v1471_v2 = vsel %vm3792_vm2, %v2804_v53, %v1470_v34  ;;  %v1534_v25 = vunpack.c.l.b16 %v1467_v59 }
 0x4e9   :  { %v1452_v40 = vunpack.c.l.b16 %v1443_v37  ;;  %v1454_v23 = vunpack.c.h.b16 %v1443_v37  ;;  %v1453_v41 = vunpack.c.l.b16 %v1447_v57  ;;  %v1455_v49 = vunpack.c.h.b16 %v1447_v57 }
 0x4ea   :  { %v1536_v32 = vunpack.c.l.b16 %v1471_v2 }
 0x4eb   :  { %v1460_v50 = vpack.c.b16 %v1452_v40, %v3290_v39  ;;  %v1462_v58 = vpack.c.b16 %v1454_v23, %v3291_v20  ;;  %v1461_v60 = vpack.c.b16 %v1453_v41, %v1453_v41  ;;  %v1463_v35 = vpack.c.b16 %v1455_v49, %v1455_v49  ;;  %v3252_v39 = vld [vmem:[#allocation15] sm:$0xff] }
 0x4ec   :  { %v1535_v20 = vunpack.c.h.b16 %v1467_v59 }
 0x4ed   :  { %v2805_v19 = vrot.slane %v1460_v50, 11  ;;  %v1474_v62 = vrot.slane %v1462_v58, 7  ;;  %v2806_v22 = vrot.slane %v1461_v60, 11  ;;  %v1478_v52 = vrot.slane %v1463_v35, 7 }
 0x4ef   :  { %v1475_v18 = vsel %vm3792_vm2, %v2805_v19, %v1474_v62  ;;  %v1479_v30 = vsel %vm3792_vm2, %v2806_v22, %v1478_v52  ;;  %v3318_v19 = vld [vmem:[%s4039_s6 + $0x1] ss:$0 sm:$0xff] }
 0x4f0   :  { %v1537_v29 = vunpack.c.l.b16 %v1475_v18  ;;  %v1538_v26 = vunpack.c.h.b16 %v1475_v18  ;;  %v1539_v37 = vunpack.c.l.b16 %v1479_v30 }
 0x4f2   :  { %v1540_v57 = vpack.c.b16 %v1537_v29, %v1534_v25  ;;  %v1541_v38 = vpack.c.b16 %v1538_v26, %v1535_v20  ;;  %v1542_v54 = vpack.c.b16 %v1539_v37, %v1536_v32 }
 0x4f4   :  { %1698 = vmatmul.bf16.vlgmr.msrb.gmra.mxu3 %v1540_v57  ;;  %1712 = vmatmul.bf16.vlgmr.msrb.gmra.mxu0 %v1541_v38 }
 0x4f5   :  { %1726 = vmatmul.bf16.vlgmr.msrb.gmra.mxu1 %v1542_v54  ;;  %1938 = vmatmul.bf16.vlgmr.msra.gmra.mxu2 %v1540_v57 }
 0x4f6   :  { %2114 = vmatpush.bf16.xpose.msrb.mxu3 %v3813_v24  ;;  %2149 = vmatpush.bf16.msrb.mxu0 %v3888_v42  ;;  %v3259_v24 = vld [vmem:[#allocation15 + $0x38] sm:$0xff] }
 0x4f7   :  { %2081 = vmatpush.bf16.msra.mxu1 %v3259_v24 }
 0x4fa   :  { %2150 = vmatpush.bf16.msrb.mxu0 %v3893_v44 }
 0x4fe   :  { %2115 = vmatpush.bf16.xpose.msrb.mxu3 %v3819_v27  ;;  %2151 = vmatpush.bf16.msrb.mxu0 %v3899_v46  ;;  %v3254_v46 = vld [vmem:[#allocation15 + $0x10] sm:$0xff] }
 0x502   :  { %2152 = vmatpush.bf16.msrb.mxu0 %v3905_v48 }
 0x504   :  { %1952 = vmatmul.bf16.vlgmr.msra.gmra.mxu3 %v1541_v38  ;;  %1966 = vmatmul.bf16.vlgmr.msra.gmra.mxu0 %v1542_v54 }
 0x506   :  { %2116 = vmatpush.bf16.xpose.msrb.mxu3 %v3825_v36  ;;  %2153 = vmatpush.bf16.msrb.mxu0 %v3909_v51  ;;  %v3258_v36 = vld [vmem:[#allocation15 + $0x30] sm:$0xff] }
 0x507   :  { %2082 = vmatpush.bf16.msra.mxu1 %v3258_v36 }
 0x50a   :  { %2154 = vmatpush.bf16.msrb.mxu0 %v3912_v61  ;;  %v3253_v61 = vld [vmem:[#allocation15 + $0x8] sm:$0xff] }
 0x50b   :  { %2083 = vmatpush.bf16.msra.mxu1 %v3257_v5 }
 0x50e   :  { %2117 = vmatpush.bf16.xpose.msrb.mxu3 %v3836_v55  ;;  %2155 = vmatpush.bf16.msrb.mxu0 %v3918_v0 }
 0x50f   :  { %2084 = vmatpush.bf16.msra.mxu1 %v3256_v10 }
 0x512   :  { %2156 = vmatpush.bf16.msrb.mxu0 %v3924_v4 }
 0x516   :  { %2118 = vmatpush.bf16.xpose.msrb.mxu3 %v3848_v6  ;;  %v3319_v6 = vld [vmem:[%s4041_s8 + $0x1] ss:$0 sm:$0xff] }
 0x51e   :  { %2119 = vmatpush.bf16.xpose.msrb.mxu3 %v3854_v8  ;;  %v3255_v8 = vld [vmem:[#allocation15 + $0x18] sm:$0xff] }
 0x51f   :  { %2085 = vmatpush.bf16.msra.mxu1 %v3255_v8 }
 0x523   :  { %2086 = vmatpush.bf16.msra.mxu1 %v3254_v46 }
 0x526   :  { %2120 = vmatpush.bf16.xpose.msrb.mxu3 %v3863_v11 }
 0x527   :  { %2087 = vmatpush.bf16.msra.mxu1 %v3253_v61 }
 0x52b   :  { %2088 = vmatpush.bf16.msra.mxu1 %v3252_v39 }
 0x52e   :  { %2121 = vmatpush.bf16.xpose.msrb.mxu3 %v3867_v12 }
 0x52f   :  { %2162 = vmatpush.bf16.msrb.mxu1 %v3890_v43 }
 0x533   :  { %2163 = vmatpush.bf16.msrb.mxu1 %v3896_v45 }
 0x537   :  { %2164 = vmatpush.bf16.msrb.mxu1 %v3902_v47 }
 0x53b   :  { %2165 = vmatpush.bf16.msrb.mxu1 %v3914_v63 }
 0x53f   :  { %2166 = vmatpush.bf16.msrb.mxu1 %v3920_v1 }
 0x543   :  { %2167 = vmatpush.bf16.msrb.mxu1 %v3926_v14 }
 0x547   :  { %2168 = vmatpush.bf16.msrb.mxu1 %v3930_v16  ;;  %v3320_v16 = vld [vmem:[%s4043_s10] ss:$0 sm:$0xff] }
 0x54b   :  { %2169 = vmatpush.bf16.msrb.mxu1 %v3933_v17 }
 0x571   :  { %v3983_v31 = vpop.f32.mrf.mxu0 }
 0x572   :  { %v1727_v62 = vpop.f32.mrf.mxu1 }
 0x577   :  { %v1699_v27 = vpop.f32.mrf.mxu3 }
 0x578   :  { %v1939_v9 = vpop.f32.mrf.mxu2  ;;  %v1700_v45 = vadd.f32 %v3318_v19, %v1699_v27 }
 0x579   :  { %v1715_v55 = vpop.f32.mrf.mxu0  ;;  %v1940_v11 = vadd.f32 %v3319_v6, %v1939_v9 }
 0x57a   :  { %v1714_v63 = vadd.f32 %v3983_v31, %v1700_v45  ;;  %v1729_v38 = vpop.f32.mrf.mxu1 }
 0x57c   :  { %v1728_v14 = vadd.f32 %v1727_v62, %v1714_v63 }
 0x57f   :  { %v1701_v7 = vpop.f32.mrf.mxu3 }
 0x580   :  { %v1941_v51 = vpop.f32.mrf.mxu2  ;;  %v1702_v22 = vadd.f32 %v3318_v19, %v1701_v7 }
 0x581   :  { %v1967_v12 = vpop.f32.mrf.mxu0  ;;  %v1942_v4 = vadd.f32 %v3319_v6, %v1941_v51 }
 0x582   :  { %v1716_v20 = vadd.f32 %v1715_v55, %v1702_v22  ;;  %v3262_v22 = vld [vmem:[#allocation17 + $0x10] sm:$0xff] }
 0x584   :  { %v1730_v27 = vadd.f32 %v1729_v38, %v1716_v20  ;;  %v3269_v38 = vld [vmem:[#allocation18 + $0x8] sm:$0xff] }
 0x587   :  { %v1953_v42 = vpop.f32.mrf.mxu3 }
 0x588   :  { %v1954_v44 = vadd.f32 %v1953_v42, %v1940_v11 }
 0x589   :  { %v1969_v23 = vpop.f32.mrf.mxu0 }
 0x58a   :  { %v1968_v48 = vadd.f32 %v1967_v12, %v1954_v44 }
 0x58c   :  { %v3001_v0 = vmul.f32 -1.442695, %v1968_v48 }
 0x58e   :  { %3339 = vpow2.f32 %v3001_v0 }
 0x58f   :  { %v1955_v3 = vpop.f32.mrf.mxu3 }
 0x590   :  { %v1956_v40 = vadd.f32 %v1955_v3, %v1942_v4 }
 0x592   :  { %v1970_v41 = vadd.f32 %v1969_v23, %v1956_v40 }
 0x594   :  { %v3340_v49 = vpop.eup %3339  ;;  %v3002_v53 = vmul.f32 -1.442695, %v1970_v41 }
 0x595   :  { %v1978_v34 = vadd.f32 1.0, %v3340_v49 }
 0x596   :  { %3341 = vpow2.f32 %v3002_v53  ;;  %v3267_v53 = vld [vmem:[#allocation17 + $0x38] sm:$0xff] }
 0x597   :  { %3343 = vrcp.f32 %v1978_v34  ;;  %v1991_v18 = vand.u32 2147483648, %v1978_v34  ;;  %vm1985_vm13 = vweird.f32 %v1978_v34  ;;  %v1989_v29 = vand.u32 2147483647, %v1978_v34  ;;  %2244 = vmatpush.bf16.msra.mxu0 %v3267_v53 }
 0x599   :  { %v1992_v37 = vor.u32 1.1754944e-38, %v1991_v18  ;;  %vm1990_vm0 = vcmp.eq.f32.partialorder %v1989_v29, 8.507059e+37  ;;  %v3275_v18 = vld [vmem:[#allocation18 + $0x38] sm:$0xff]  ;;  %v3273_v29 = vld [vmem:[#allocation18 + $0x28] sm:$0xff] }
 0x59c   :  { %v3342_v50 = vpop.eup %3341 }
 0x59d   :  { %v3344_v58 = vpop.eup %3343  ;;  %v1979_v59 = vadd.f32 1.0, %v3342_v50  ;;  %v3264_v50 = vld [vmem:[#allocation17 + $0x20] sm:$0xff] }
 0x59e   :  { %v1981_v60 = vmul.f32 %v3344_v58, %v1978_v34  ;;  %vm1986_vm12 = vweird.f32 %v3344_v58  ;;  %v3266_v34 = vld [vmem:[#allocation17 + $0x30] sm:$0xff] }
 0x59f   :  { %3345 = vrcp.f32 %v1979_v59  ;;  %vm1987_vm14 = vmor %vm1985_vm13, %vm1986_vm12  ;;  %v2006_v26 = vand.u32 2147483648, %v1979_v59  ;;  %v2004_v1 = vand.u32 2147483647, %v1979_v59  ;;  %vm2000_vm1 = vweird.f32 %v1979_v59  ;;  %2245 = vmatpush.bf16.msra.mxu0 %v3266_v34 }
 0x5a0   :  { %v1982_v35 = vsub.f32 1.0, %v1981_v60 }
 0x5a1   :  { %v2007_v24 = vor.u32 1.1754944e-38, %v2006_v26  ;;  %vm2005_vm3 = vcmp.eq.f32.partialorder %v2004_v1, 8.507059e+37  ;;  %v3272_v1 = vld [vmem:[#allocation18 + $0x20] sm:$0xff] }
 0x5a2   :  { %v1983_v43 = vmul.f32 %v3344_v58, %v1982_v35 }
 0x5a3   :  { %2246 = vmatpush.bf16.msra.mxu0 %v3265_v33 }
 0x5a4   :  { %v1984_v47 = vadd.f32 %v3344_v58, %v1983_v43 }
 0x5a5   :  { %v3346_v2 = vpop.eup %3345 }
 0x5a6   :  { %v1996_v52 = vmul.f32 %v3346_v2, %v1979_v59  ;;  %v1988_v30 = vsel %vm1987_vm14, %v3344_v58, %v1984_v47  ;;  %vm2001_vm15 = vweird.f32 %v3346_v2  ;;  %v3263_v59 = vld [vmem:[#allocation17 + $0x18] sm:$0xff]  ;;  %v3260_v47 = vld [vmem:[#allocation17] sm:$0xff] }
 0x5a7   :  { %v1993_v54 = vsel %vm1990_vm0, %v1992_v37, %v1988_v30  ;;  %vm2002_vm2 = vmor %vm2000_vm1, %vm2001_vm15  ;;  %2247 = vmatpush.bf16.msra.mxu0 %v3264_v50  ;;  %v3271_v37 = vld [vmem:[#allocation18 + $0x18] sm:$0xff] }
 0x5a8   :  { %v1997_v25 = vsub.f32 1.0, %v1996_v52  ;;  %v3999_v55 = vmul.f32 %v1993_v54, %v1728_v14  ;;  %v3261_v52 = vld [vmem:[#allocation17 + $0x8] sm:$0xff]  ;;  %v3268_v54 = vld [vmem:[#allocation18] sm:$0xff] }
 0x5aa   :  { %v1998_v32 = vmul.f32 %v3346_v2, %v1997_v25  ;;  %v3274_v25 = vld [vmem:[#allocation18 + $0x30] sm:$0xff] }
 0x5ab   :  { %2248 = vmatpush.bf16.msra.mxu0 %v3263_v59 }
 0x5ac   :  { %v1999_v57 = vadd.f32 %v3346_v2, %v1998_v32 }
 0x5ae   :  { %v2003_v31 = vsel %vm2002_vm2, %v3346_v2, %v1999_v57  ;;  %v3270_v57 = vld [vmem:[#allocation18 + $0x10] sm:$0xff] }
 0x5af   :  { %v2008_v36 = vsel %vm2005_vm3, %v2007_v24, %v2003_v31  ;;  %2249 = vmatpush.bf16.msra.mxu0 %v3262_v22  ;;  %v3321_v24 = vld [vmem:[%s4045_s12] ss:$0 sm:$0xff] }
 0x5b0   :  { %v4001_v5 = vmul.f32 %v2008_v36, %v1730_v27 }
 0x5b2   :  { %v2012_v7 = vpack.c.bf16 %v4001_v5, %v3999_v55 }
 0x5b3   :  { %2250 = vmatpush.bf16.msra.mxu0 %v3261_v52 }
 0x5b4   :  { %2089 = vmatmul.bf16.vlgmr.msra.gmra.mxu1 %v2012_v7 }
 0x5b5   :  { %2335 = vmatpush.bf16.msra.mxu1 %v3275_v18 }
 0x5b7   :  { %2251 = vmatpush.bf16.msra.mxu0 %v3260_v47 }
 0x5b9   :  { %2336 = vmatpush.bf16.msra.mxu1 %v3274_v25 }
 0x5bd   :  { %2337 = vmatpush.bf16.msra.mxu1 %v3273_v29 }
 0x5c1   :  { %2338 = vmatpush.bf16.msra.mxu1 %v3272_v1 }
 0x5c5   :  { %2339 = vmatpush.bf16.msra.mxu1 %v3271_v37 }
 0x5c9   :  { %2340 = vmatpush.bf16.msra.mxu1 %v3270_v57 }
 0x5cd   :  { %2341 = vmatpush.bf16.msra.mxu1 %v3269_v38 }
 0x5d1   :  { %2342 = vmatpush.bf16.msra.mxu1 %v3268_v54 }
 0x631   :  { %v2090_v9 = vpop.f32.mrf.mxu1 }
 0x632   :  { %v2091_v10 = vadd.f32 %v3320_v16, %v2090_v9 }
 0x634   :  { %v2095_v6 = vadd.f32 %v2091_v10, %v1047_v15 }
 0x636   :  { %v2097_v8 = vmul.f32 0.70710677, %v2095_v6 }
 0x638   :  { %v2099_v11 = vpack.c.bf16 %v2097_v8, %v2097_v8 }
 0x639   :  { %v2092_v12 = vpop.f32.mrf.mxu1 }
 0x63a   :  { %v2093_v42 = vadd.f32 %v3320_v16, %v2092_v12  ;;  %2109 = vmatmul.bf16.vlgmr.msrb.gmra.mxu2 %v2099_v11 }
 0x63c   :  { %v2096_v17 = vadd.f32 %v2093_v42, %v1048_v21 }
 0x63e   :  { %v2098_v44 = vmul.f32 0.70710677, %v2096_v17 }
 0x640   :  { %v2100_v46 = vpack.c.bf16 %v2098_v44, %v2098_v44  ;;  %v3322_v44 = vld [vmem:[%s4047_s14] ss:$0 sm:$0xff] }
 0x642   :  { %2122 = vmatmul.bf16.vlgmr.msrb.gmra.mxu3 %v2100_v46 }
 0x6bd   :  { %v2110_v48 = vpop.f32.mrf.mxu2 }
 0x6be   :  { %v2127_v51 = vsel %vm364_vm11, %v2110_v48, -1e+30 }
 0x6bf   :  { %2129 = vmax.xlane.f32.xlu2 %v2127_v51 }
 0x6c5   :  { %v2112_v61 = vpop.f32.mrf.mxu2  ;;  %v2123_v0 = vpop.f32.mrf.mxu3 }
 0x6c6   :  { %v2128_v15 = vsel %vm364_vm11, %v2123_v0, -1e+30 }
 0x6c7   :  { %2131 = vmax.xlane.f32.xlu2 %v2128_v15 }
 0x6cd   :  { %v2125_v4 = vpop.f32.mrf.mxu3 }
 0x732   :  { %v2130_v3 = vpop.xlane.xlu2 %2129 }
 0x733   :  { %v2133_v39 = vsub.f32 %v2127_v51, %v2130_v3 }
 0x735   :  { %v2135_v40 = vmul.f32 1.442695, %v2133_v39 }
 0x737   :  { %3347 = vpow2.f32 %v2135_v40 }
 0x73a   :  { %v2132_v13 = vpop.xlane.xlu2 %2131 }
 0x73b   :  { %v2134_v21 = vsub.f32 %v2128_v15, %v2132_v13 }
 0x73d   :  { %v3348_v23 = vpop.eup %3347  ;;  %v2137_v41 = vmul.f32 1.442695, %v2134_v21 }
 0x73e   :  { %2139 = vadd.xlane.f32.xlu0 %v3348_v23 }
 0x73f   :  { %3349 = vpow2.f32 %v2137_v41 }
 0x745   :  { %v3350_v49 = vpop.eup %3349 }
 0x746   :  { %2141 = vadd.xlane.f32.xlu1 %v3350_v49 }
 0x7b1   :  { %v2140_v58 = vpop.xlane.xlu0 %2139 }
 0x7b2   :  { %3351 = vrcp.f32 %v2140_v58 }
 0x7b8   :  { %v3352_v60 = vpop.eup %3351 }
 0x7b9   :  { %v2145_v35 = vmul.f32 %v3352_v60, %v3348_v23  ;;  %v2142_v19 = vpop.xlane.xlu1 %2141 }
 0x7ba   :  { %3353 = vrcp.f32 %v2142_v19 }
 0x7bb   :  { %v2147_v43 = vpack.c.bf16 %v2145_v35, %v2145_v35 }
 0x7bd   :  { %2157 = vmatmul.bf16.vlgmr.msrb.gmra.mxu0 %v2147_v43 }
 0x7c0   :  { %v3354_v62 = vpop.eup %3353 }
 0x7c1   :  { %v2146_v2 = vmul.f32 %v3354_v62, %v3350_v49 }
 0x7c3   :  { %v2148_v45 = vpack.c.bf16 %v2146_v2, %v2146_v2 }
 0x7c5   :  { %2170 = vmatmul.bf16.vlgmr.msrb.gmra.mxu1 %v2148_v45 }
 0x83a   :  { %v2158_v63 = vpop.f32.mrf.mxu0 }
 0x842   :  { %v2160_v20 = vpop.f32.mrf.mxu0  ;;  %v2171_v26 = vpop.f32.mrf.mxu1 }
 0x843   :  { %v2175_v30 = vpack.c.bf16 %v2171_v26, %v2158_v63 }
 0x845   :  { %2252 = vmatmul.bf16.vlgmr.msra.gmra.mxu0 %v2175_v30 }
 0x84a   :  { %v2173_v32 = vpop.f32.mrf.mxu1 }
 0x8c2   :  { %v2253_v14 = vpop.f32.mrf.mxu0 }
 0x8c3   :  { %v2254_v27 = vadd.f32 %v3321_v24, %v2253_v14 }
 0x8c5   :  { %v2258_v31 = vmul.f32 0.70710677, %v2254_v27 }
 0x8c7   :  { %v2260_v7 = vadd.f32 %v2258_v31, %v3999_v55 }
 0x8c9   :  { %v2262_v10 = vadd.f32 %v2260_v7, %v3941_v56 }
 0x8ca   :  { %v2255_v36 = vpop.f32.mrf.mxu0 }
 0x8cb   :  { %v2256_v16 = vadd.f32 %v3321_v24, %v2255_v36  ;;  %v2264_v11 = vmul.f32 0.70710677, %v2262_v10 }
 0x8cd   :  { %v2259_v9 = vmul.f32 0.70710677, %v2256_v16 }
 0x8cf   :  { %v2261_v6 = vadd.f32 %v2259_v9, %v4001_v5 }
 0x8d1   :  { %v2263_v8 = vadd.f32 %v2261_v6, %v3948_v28 }
 0x8d3   :  { %v2265_v12 = vmul.f32 0.70710677, %v2263_v8 }
 0x8d5   :  { %v2266_v42 = vpack.c.bf16 %v2265_v12, %v2264_v11 }
 0x8d7   :  { %2343 = vmatmul.bf16.vlgmr.msra.gmra.mxu1 %v2266_v42 }
 0x954   :  { %v2344_v17 = vpop.f32.mrf.mxu1 }
 0x955   :  { %v2345_v56 = vadd.f32 %v3322_v44, %v2344_v17 }
 0x95c   :  { %v2346_v46 = vpop.f32.mrf.mxu1 }
 0x95d   :  { %v2347_v55 = vadd.f32 %v3322_v44, %v2346_v46 }
 0x95f   :  { %v3295_v5 = vpack.c.bf16 %v2347_v55, %v2345_v56 }
 0x961   :  { %3296 = vst [vmem:[#allocation20] sm:$0xff] %v3295_v5  }
 0x962   :  { %2365 = dma.vmem_to_hbm [thread:$0]  %s2358_s4, 128, %s2360_s7, [#allocation5], %s3634_s26, %s3634_s26, %s3635_s27  }
 0x963   :  { %3631 = dma.done.wait [#allocation5], 128  }
 0x964   :  { %3632 = vsyncadd [#allocation5], 4294967168 }
 0x965   :  { %2370 = vsyncpa [#allocation4], 1 }
 0x966   :  { %2371 = vsyncpa [#allocation7], 1 }
 0x967   :  { %2372 = vsyncpa [#allocation10], 1 }
 0x968   :  { %2373 = vsyncpa [#allocation13], 1 }
 0x969   :  { %2374 = vsyncpa [#allocation16], 1 }
 0x96a   :  { %2375 = vsyncpa [#allocation19], 1 }
 0x96b   :  { %2376 = vsyncpa [#allocation5], 1 }

</bundles_post_ra>
